<compile_context>
chip_gen: v5e
topology: v5e:2x2
jax: 0.10.0
libtpu: 0.0.40
codegen_flags: <defaults>
</compile_context>

<pallas_src>
import functools
import math

import jax
import jax.numpy as jnp
from jax import lax
from jax.experimental import pallas as pl
from jax.experimental.pallas import tpu as pltpu

# ---------------------------------------------------------------------------
# Small synthetic BERT config (pretrained weights are not loadable here).
# ---------------------------------------------------------------------------
VOCAB_SIZE = 128
HIDDEN = 32
NUM_LAYERS = 2
NUM_HEADS = 2
INTERMEDIATE = 64
MAX_POS = 16
NUM_GRAVITA = 3
NUM_TIPOLOGIA = 7
NUM_ENTI = 5          # stand-in for len(enti_labels) from the CSV
HEAD_PAD = 128        # lane-dense packed width (heads / qkv / per-layer vecs)
LN_EPS = 1e-12


def _layer_norm(x, g, b, eps=LN_EPS):
    mu = jnp.mean(x, axis=-1, keepdims=True)
    xc = x - mu
    var = jnp.mean(xc * xc, axis=-1, keepdims=True)
    return xc * lax.rsqrt(var + eps) * g + b


# ---------------------------------------------------------------------------
# Single fused forward kernel.
# ---------------------------------------------------------------------------
def fused_forward_kernel(x_ref, sel_ref, keep_ref,
                         lvecs_ref, wqkv_ref, wo_ref, w1_ref, w2_ref,
                         gvecs_ref, phw_ref, oh_ref,
                         logits_ref, loss_ref,
                         *, batch, num_heads):
    f32 = jnp.float32
    x = x_ref[...]                            # [B*S, H] summed embeddings ([S,B] order)
    bs, hdim = x.shape
    dh = hdim // num_heads
    imd = w1_ref.shape[2]
    num_layers = wqkv_ref.shape[0]

    gv = gvecs_ref[...]                       # [4, 128]: emb_ln_g | emb_ln_b | pool_b | heads_b

    # Block-diagonal attention mask generated on the fly from the tiny [BS, B]
    # batch selector (one MXU pass) + [1, BS] key-padding keep row.
    sel = sel_ref[...]                        # [BS, B] one-hot batch indicator
    same = lax.dot_general(sel, sel, (((1,), (1,)), ((), ())),
                           preferred_element_type=f32)          # [BS, BS] in {0,1}
    bias = (same * keep_ref[...] - 1.0) * 1e9                   # 0 keep / -1e9 mask

    # Embedding LayerNorm.
    h = _layer_norm(x, gv[0:1, :hdim], gv[1:2, :hdim])

    # Encoder layers (static unrolled loop; weights stay resident in VMEM at toy size).
    for l in range(num_layers):
        lv = lvecs_ref[l]                     # [8, 128] all per-layer vectors
        wo = wo_ref[l]                        # [H, H]

        # One fused, lane-dense QKV projection (scale already folded into q cols).
        qkv = jnp.dot(h, wqkv_ref[l], preferred_element_type=f32) + lv[0:1, :]

        attn = None
        for hd in range(num_heads):
            lo = hd * dh
            q = qkv[:, lo:lo + dh]                                # [BS, dh]
            k = qkv[:, hdim + lo:hdim + lo + dh]
            v = qkv[:, 2 * hdim + lo:2 * hdim + lo + dh]
            sc = lax.dot_general(q, k, (((1,), (1,)), ((), ())),
                                 preferred_element_type=f32) + bias
            m = jnp.max(sc, axis=-1, keepdims=True)
            e = jnp.exp(sc - m)
            p = e * pl.reciprocal(jnp.sum(e, axis=-1, keepdims=True), approx=True)
            ctx = jnp.dot(p, v, preferred_element_type=f32)       # [BS, dh]
            # Fold the head concat into the output projection (row slice of wo).
            part = jnp.dot(ctx, wo[lo:lo + dh, :], preferred_element_type=f32)
            attn = part if attn is None else attn + part
        attn = attn + lv[1:2, :hdim]                              # bo

        h = _layer_norm(h + attn, lv[2:3, :hdim], lv[3:4, :hdim])

        ff = jnp.dot(h, w1_ref[l], preferred_element_type=f32) + lv[4:5, :imd]
        # TODO(synk): HF BERT uses erf-based GELU; tanh approximation kept here
        # (guaranteed Mosaic/EUP lowering) -> tiny numeric mismatch vs reference.
        ff = jax.nn.gelu(ff, approximate=True)
        ff = jnp.dot(ff, w2_ref[l], preferred_element_type=f32) + lv[5:6, :hdim]

        h = _layer_norm(h + ff, lv[6:7, :hdim], lv[7:8, :hdim])

    # Pooler: with the [S, B] token layout the [CLS] rows are the first `batch`
    # rows -> contiguous slice, no gather/concat.
    cls = h[0:batch, :]                                           # [B, H]
    pw = phw_ref[0]                                               # [H, 128] (cols :H used)
    pooled = jnp.tanh(jnp.dot(cls, pw[:, 0:hdim], preferred_element_type=f32)
                      + gv[2:3, :hdim])

    # All three heads as one lane-dense matmul + one unmasked 128-lane store.
    logits = jnp.dot(pooled, phw_ref[1], preferred_element_type=f32) + gv[3:4, :]
    logits_ref[...] = logits                                      # [B, 128]

    # Summed cross-entropy over the full 128-lane logits with iota lane masks
    # (mean over batch per head, like torch CrossEntropyLoss).
    oh = oh_ref[...]                                              # [B, 128] packed one-hots
    lane = lax.broadcasted_iota(jnp.int32, (batch, logits.shape[1]), 1)
    inv_b = 1.0 / batch

    def ce(lo, hi):
        mask = (lane >= lo) & (lane < hi)
        ml = jnp.where(mask, logits, -1e30)
        m = jnp.max(ml, axis=-1, keepdims=True)
        e = jnp.where(mask, jnp.exp(ml - m), 0.0)
        lse = m + jnp.log(jnp.sum(e, axis=-1, keepdims=True))
        nll = lse - jnp.sum(jnp.where(mask, oh * logits, 0.0), axis=-1, keepdims=True)
        return jnp.sum(nll, axis=0, keepdims=True) * inv_b        # [1, 1]

    c1 = NUM_GRAVITA
    c2 = c1 + NUM_TIPOLOGIA
    c3 = c2 + NUM_ENTI
    loss_ref[...] = ce(0, c1) + ce(c1, c2) + ce(c2, c3)


def _vmem_spec():
    return pl.BlockSpec(memory_space=pltpu.MemorySpace.VMEM)


def fused_forward(params, x2d, sel, keep, oh_packed, batch):
    kern = functools.partial(fused_forward_kernel, batch=batch, num_heads=NUM_HEADS)
    n_inputs = 11
    return pl.pallas_call(
        kern,
        out_shape=(jax.ShapeDtypeStruct((batch, HEAD_PAD), jnp.float32),
                   jax.ShapeDtypeStruct((1, 1), jnp.float32)),
        in_specs=[_vmem_spec() for _ in range(n_inputs)],
        out_specs=(_vmem_spec(), _vmem_spec()),
    )(x2d, sel, keep,
      params["lvecs"], params["wqkv"], params["wo"], params["w1"], params["w2"],
      params["gvecs"], params["pool_heads_w"], oh_packed)


# ---------------------------------------------------------------------------
# Parameter init (deterministic) with packed / stacked weights.
# ---------------------------------------------------------------------------
def init_params(key):
    keys = iter(jax.random.split(key, 64))

    def nrm(shape):
        return 0.02 * jax.random.normal(next(keys), shape, jnp.float32)

    params = {
        "word_emb": nrm((VOCAB_SIZE, HIDDEN)),
        "pos_emb": nrm((MAX_POS, HIDDEN)),
        "type_emb": nrm((2, HIDDEN)),
    }

    # Global vectors packed [4, 128]: emb_ln_g | emb_ln_b | pool_b | heads_b.
    gvecs = jnp.zeros((4, HEAD_PAD), jnp.float32)
    gvecs = gvecs.at[0, :HIDDEN].set(1.0)          # emb LN gamma = 1; betas/biases = 0
    params["gvecs"] = gvecs

    # Pooler + packed classifier heads share one [2, H, 128] weight blob.
    pool_w = nrm((HIDDEN, HIDDEN))
    grav_w = nrm((HIDDEN, NUM_GRAVITA))
    tip_w = nrm((HIDDEN, NUM_TIPOLOGIA))
    enti_w = nrm((HIDDEN, NUM_ENTI))
    used = NUM_GRAVITA + NUM_TIPOLOGIA + NUM_ENTI
    heads_w = jnp.concatenate(
        [grav_w, tip_w, enti_w, jnp.zeros((HIDDEN, HEAD_PAD - used), jnp.float32)],
        axis=-1)
    phw = jnp.zeros((2, HIDDEN, HEAD_PAD), jnp.float32)
    phw = phw.at[0, :, :HIDDEN].set(pool_w)
    phw = phw.at[1].set(heads_w)
    params["pool_heads_w"] = phw

    # Per-layer fused / packed weights, stacked along a leading L axis.
    dh = HIDDEN // NUM_HEADS
    scale = 1.0 / math.sqrt(dh)
    wqkv_l, wo_l, w1_l, w2_l, lvecs_l = [], [], [], [], []
    for _ in range(NUM_LAYERS):
        wq, wk, wv = nrm((HIDDEN, HIDDEN)), nrm((HIDDEN, HIDDEN)), nrm((HIDDEN, HIDDEN))
        wqkv = jnp.zeros((HIDDEN, HEAD_PAD), jnp.float32)
        wqkv = wqkv.at[:, 0:HIDDEN].set(wq * scale)        # 1/sqrt(dh) folded into q
        wqkv = wqkv.at[:, HIDDEN:2 * HIDDEN].set(wk)
        wqkv = wqkv.at[:, 2 * HIDDEN:3 * HIDDEN].set(wv)
        wqkv_l.append(wqkv)
        wo_l.append(nrm((HIDDEN, HIDDEN)))
        w1_l.append(nrm((HIDDEN, INTERMEDIATE)))
        w2_l.append(nrm((INTERMEDIATE, HIDDEN)))
        # Per-layer vectors, one (8,128) tile:
        # row0 bqkv | row1 bo | row2 ln1_g | row3 ln1_b | row4 b1 | row5 b2 |
        # row6 ln2_g | row7 ln2_b   (biases zero, LN gammas one at init)
        lv = jnp.zeros((8, HEAD_PAD), jnp.float32)
        lv = lv.at[2, :HIDDEN].set(1.0)
        lv = lv.at[6, :HIDDEN].set(1.0)
        lvecs_l.append(lv)

    params["wqkv"] = jnp.stack(wqkv_l, axis=0)
    params["wo"] = jnp.stack(wo_l, axis=0)
    params["w1"] = jnp.stack(w1_l, axis=0)
    params["w2"] = jnp.stack(w2_l, axis=0)
    params["lvecs"] = jnp.stack(lvecs_l, axis=0)
    return params


# ---------------------------------------------------------------------------
# Forward wrapper (jitted core around the single Pallas call).
# ---------------------------------------------------------------------------
@jax.jit
def _forward_core(params, input_ids, attention_mask,
                  gravita_label, tipologia_label, enti_label):
    B, S = input_ids.shape
    H = HIDDEN
    BS = B * S

    # Embedding lookup (gather stays in plain JAX); tokens re-laid out to
    # [S, B, H] so row index = s*B + b and the CLS rows are rows 0..B-1.
    emb = (params["word_emb"][input_ids]
           + params["pos_emb"][None, :S, :]
           + params["type_emb"][0][None, None, :])               # [B, S, H]
    x2d = jnp.transpose(emb, (1, 0, 2)).reshape(BS, H).astype(jnp.float32)

    # Tiny mask inputs (the dense [BS, BS] bias is built inside the kernel).
    bidx = jnp.arange(BS, dtype=jnp.int32) % B                   # batch of row s*B+b
    sel = (bidx[:, None] == jnp.arange(B, dtype=jnp.int32)[None, :]).astype(jnp.float32)
    keep = attention_mask.astype(jnp.float32).T.reshape(1, BS)   # [1, BS] key keep

    # Packed one-hot labels, laid out like the packed head columns.
    ohg = jax.nn.one_hot(gravita_label, NUM_GRAVITA, dtype=jnp.float32)
    oht = jax.nn.one_hot(tipologia_label, NUM_TIPOLOGIA, dtype=jnp.float32)
    ohe = jax.nn.one_hot(enti_label, NUM_ENTI, dtype=jnp.float32)
    used = NUM_GRAVITA + NUM_TIPOLOGIA + NUM_ENTI
    oh_packed = jnp.concatenate(
        [ohg, oht, ohe, jnp.zeros((B, HEAD_PAD - used), jnp.float32)], axis=-1)

    logits, loss = fused_forward(params, x2d, sel, keep, oh_packed, B)
    return logits, loss


def bert_multitask_forward(params, input_ids, attention_mask=None,
                           gravita_label=None, tipologia_label=None,
                           enti_label=None):
    B, S = input_ids.shape
    if attention_mask is None:
        attention_mask = jnp.ones((B, S), jnp.float32)

    have_labels = (gravita_label is not None and tipologia_label is not None
                   and enti_label is not None)
    zg = jnp.zeros((B,), jnp.int32)
    logits, loss = _forward_core(
        params, input_ids, attention_mask,
        gravita_label if have_labels else zg,
        tipologia_label if have_labels else zg,
        enti_label if have_labels else zg)

    c1 = NUM_GRAVITA
    c2 = c1 + NUM_TIPOLOGIA
    c3 = c2 + NUM_ENTI
    return {
        "loss": loss[0, 0] if have_labels else None,
        "gravita": logits[:, 0:c1],
        "tipologia": logits[:, c1:c2],
        "enti": logits[:, c2:c3],
    }


# ---------------------------------------------------------------------------
if __name__ == "__main__":
    key = jax.random.PRNGKey(0)
    pkey, ikey, gkey, tkey, ekey = jax.random.split(key, 5)

    params = init_params(pkey)

    B, S = 2, 8
    input_ids = jax.random.randint(ikey, (B, S), 0, VOCAB_SIZE, dtype=jnp.int32)
    attention_mask = jnp.array([[1, 1, 1, 1, 1, 1, 0, 0],
                                [1, 1, 1, 1, 1, 1, 1, 1]], dtype=jnp.float32)
    gravita_label = jax.random.randint(gkey, (B,), 0, NUM_GRAVITA, dtype=jnp.int32)
    tipologia_label = jax.random.randint(tkey, (B,), 0, NUM_TIPOLOGIA, dtype=jnp.int32)
    enti_label = jax.random.randint(ekey, (B,), 0, NUM_ENTI, dtype=jnp.int32)

    out = bert_multitask_forward(params, input_ids, attention_mask,
                                 gravita_label, tipologia_label, enti_label)

    jax.block_until_ready(out["loss"])
    jax.block_until_ready(out["gravita"])
    jax.block_until_ready(out["tipologia"])
    jax.block_until_ready(out["enti"])

    assert out["gravita"].shape == (B, NUM_GRAVITA)
    assert out["tipologia"].shape == (B, NUM_TIPOLOGIA)
    assert out["enti"].shape == (B, NUM_ENTI)
    assert jnp.isfinite(out["loss"]).item()
    print("KERNEL_OK")
</pallas_src>

<mosaic_0001>
module attributes {stable_mosaic.version = 11 : i64} {
  func.func @fused_forward_kernel(%arg0: memref<16x32xf32, #tpu.memory_space<vmem>>, %arg1: memref<16x2xf32, #tpu.memory_space<vmem>>, %arg2: memref<1x16xf32, #tpu.memory_space<vmem>>, %arg3: memref<2x8x128xf32, #tpu.memory_space<vmem>>, %arg4: memref<2x32x128xf32, #tpu.memory_space<vmem>>, %arg5: memref<2x32x32xf32, #tpu.memory_space<vmem>>, %arg6: memref<2x32x64xf32, #tpu.memory_space<vmem>>, %arg7: memref<2x64x32xf32, #tpu.memory_space<vmem>>, %arg8: memref<4x128xf32, #tpu.memory_space<vmem>>, %arg9: memref<2x32x128xf32, #tpu.memory_space<vmem>>, %arg10: memref<2x128xf32, #tpu.memory_space<vmem>>, %arg11: memref<2x128xf32, #tpu.memory_space<vmem>>, %arg12: memref<1x1xf32, #tpu.memory_space<vmem>>) attributes {dimension_semantics = [], scalar_prefetch = 0 : i64, scratch_operands = 0 : i64, tpu.core_type = #tpu.core_type<tc>} {
    %c0 = arith.constant 0 : index
    %c0_0 = arith.constant 0 : index
    %0 = vector.load %arg0[%c0, %c0_0] : memref<16x32xf32, #tpu.memory_space<vmem>>, vector<16x32xf32>
    %c0_1 = arith.constant 0 : index
    %c0_2 = arith.constant 0 : index
    %1 = vector.load %arg8[%c0_1, %c0_2] : memref<4x128xf32, #tpu.memory_space<vmem>>, vector<4x128xf32>
    %c0_3 = arith.constant 0 : index
    %c0_4 = arith.constant 0 : index
    %2 = vector.load %arg1[%c0_3, %c0_4] : memref<16x2xf32, #tpu.memory_space<vmem>>, vector<16x2xf32>
    %cst = arith.constant dense<0.000000e+00> : vector<16x16xf32>
    %3 = tpu.matmul %2, %2, %cst {dimension_numbers = #tpu.dot_dimension_numbers<[1], [1], [0], [0], [0, 0, 1, 0], [], []>} : vector<16x2xf32>, vector<16x2xf32>, vector<16x16xf32> -> vector<16x16xf32>
    %c0_5 = arith.constant 0 : index
    %c0_6 = arith.constant 0 : index
    %4 = vector.load %arg2[%c0_5, %c0_6] : memref<1x16xf32, #tpu.memory_space<vmem>>, vector<1x16xf32>
    %5 = vector.broadcast %4 : vector<1x16xf32> to vector<16x16xf32>
    %6 = arith.mulf %3, %5 : vector<16x16xf32>
    %cst_7 = arith.constant 1.000000e+00 : f32
    %7 = vector.broadcast %cst_7 : f32 to vector<16x16xf32>
    %8 = arith.subf %6, %7 : vector<16x16xf32>
    %cst_8 = arith.constant 1.000000e+09 : f32
    %9 = vector.broadcast %cst_8 : f32 to vector<16x16xf32>
    %10 = arith.mulf %8, %9 : vector<16x16xf32>
    %11 = vector.extract_strided_slice %1 {offsets = [0, 0], sizes = [1, 32], strides = [1, 1]} : vector<4x128xf32> to vector<1x32xf32>
    %12 = vector.extract_strided_slice %1 {offsets = [1, 0], sizes = [1, 32], strides = [1, 1]} : vector<4x128xf32> to vector<1x32xf32>
    %cst_9 = arith.constant dense<0.000000e+00> : vector<16xf32>
    %13 = vector.multi_reduction <add>, %0, %cst_9 [1] : vector<16x32xf32> to vector<16xf32>
    %14 = vector.shape_cast %13 : vector<16xf32> to vector<16x1xf32>
    %cst_10 = arith.constant 3.200000e+01 : f32
    %15 = vector.broadcast %cst_10 : f32 to vector<16x1xf32>
    %16 = arith.divf %14, %15 : vector<16x1xf32>
    %17 = vector.broadcast %16 : vector<16x1xf32> to vector<16x32xf32>
    %18 = arith.subf %0, %17 : vector<16x32xf32>
    %19 = arith.mulf %18, %18 : vector<16x32xf32>
    %cst_11 = arith.constant dense<0.000000e+00> : vector<16xf32>
    %20 = vector.multi_reduction <add>, %19, %cst_11 [1] : vector<16x32xf32> to vector<16xf32>
    %21 = vector.shape_cast %20 : vector<16xf32> to vector<16x1xf32>
    %cst_12 = arith.constant 3.200000e+01 : f32
    %22 = vector.broadcast %cst_12 : f32 to vector<16x1xf32>
    %23 = arith.divf %21, %22 : vector<16x1xf32>
    %cst_13 = arith.constant 9.99999996E-13 : f32
    %24 = vector.broadcast %cst_13 : f32 to vector<16x1xf32>
    %25 = arith.addf %23, %24 : vector<16x1xf32>
    %26 = math.rsqrt %25 : vector<16x1xf32>
    %27 = vector.broadcast %26 : vector<16x1xf32> to vector<16x32xf32>
    %28 = arith.mulf %18, %27 : vector<16x32xf32>
    %29 = vector.broadcast %11 : vector<1x32xf32> to vector<16x32xf32>
    %30 = arith.mulf %28, %29 : vector<16x32xf32>
    %31 = vector.broadcast %12 : vector<1x32xf32> to vector<16x32xf32>
    %32 = arith.addf %30, %31 : vector<16x32xf32>
    %c0_14 = arith.constant 0 : index
    %c0_15 = arith.constant 0 : index
    %c0_16 = arith.constant 0 : index
    %33 = vector.load %arg3[%c0_14, %c0_15, %c0_16] : memref<2x8x128xf32, #tpu.memory_space<vmem>>, vector<1x8x128xf32>
    %34 = vector.shape_cast %33 : vector<1x8x128xf32> to vector<8x128xf32>
    %c0_17 = arith.constant 0 : index
    %c0_18 = arith.constant 0 : index
    %c0_19 = arith.constant 0 : index
    %35 = vector.load %arg5[%c0_17, %c0_18, %c0_19] : memref<2x32x32xf32, #tpu.memory_space<vmem>>, vector<1x32x32xf32>
    %36 = vector.shape_cast %35 : vector<1x32x32xf32> to vector<32x32xf32>
    %c0_20 = arith.constant 0 : index
    %c0_21 = arith.constant 0 : index
    %c0_22 = arith.constant 0 : index
    %37 = vector.load %arg4[%c0_20, %c0_21, %c0_22] : memref<2x32x128xf32, #tpu.memory_space<vmem>>, vector<1x32x128xf32>
    %38 = vector.shape_cast %37 : vector<1x32x128xf32> to vector<32x128xf32>
    %cst_23 = arith.constant dense<0.000000e+00> : vector<16x128xf32>
    %39 = tpu.matmul %32, %38, %cst_23 {dimension_numbers = #tpu.dot_dimension_numbers<[1], [0], [0], [1], [0, 0, 1, 1], [], []>} : vector<16x32xf32>, vector<32x128xf32>, vector<16x128xf32> -> vector<16x128xf32>
    %40 = vector.extract_strided_slice %34 {offsets = [0, 0], sizes = [1, 128], strides = [1, 1]} : vector<8x128xf32> to vector<1x128xf32>
    %41 = vector.broadcast %40 : vector<1x128xf32> to vector<16x128xf32>
    %42 = arith.addf %39, %41 : vector<16x128xf32>
    %43 = vector.extract_strided_slice %42 {offsets = [0, 0], sizes = [16, 16], strides = [1, 1]} : vector<16x128xf32> to vector<16x16xf32>
    %44 = vector.extract_strided_slice %42 {offsets = [0, 32], sizes = [16, 16], strides = [1, 1]} : vector<16x128xf32> to vector<16x16xf32>
    %45 = vector.extract_strided_slice %42 {offsets = [0, 64], sizes = [16, 16], strides = [1, 1]} : vector<16x128xf32> to vector<16x16xf32>
    %cst_24 = arith.constant dense<0.000000e+00> : vector<16x16xf32>
    %46 = tpu.matmul %43, %44, %cst_24 {dimension_numbers = #tpu.dot_dimension_numbers<[1], [1], [0], [0], [0, 0, 1, 0], [], []>} : vector<16x16xf32>, vector<16x16xf32>, vector<16x16xf32> -> vector<16x16xf32>
    %47 = arith.addf %46, %10 : vector<16x16xf32>
    %cst_25 = arith.constant dense<0xFF800000> : vector<16xf32>
    %48 = vector.multi_reduction <maximumf>, %47, %cst_25 [1] : vector<16x16xf32> to vector<16xf32>
    %49 = vector.shape_cast %48 : vector<16xf32> to vector<16x1xf32>
    %50 = vector.broadcast %49 : vector<16x1xf32> to vector<16x16xf32>
    %51 = arith.subf %47, %50 : vector<16x16xf32>
    %52 = math.exp %51 : vector<16x16xf32>
    %cst_26 = arith.constant dense<0.000000e+00> : vector<16xf32>
    %53 = vector.multi_reduction <add>, %52, %cst_26 [1] : vector<16x16xf32> to vector<16xf32>
    %54 = vector.shape_cast %53 : vector<16xf32> to vector<16x1xf32>
    %55 = tpu.reciprocal %54 {approx = true} : vector<16x1xf32> -> vector<16x1xf32>
    %56 = vector.broadcast %55 : vector<16x1xf32> to vector<16x16xf32>
    %57 = arith.mulf %52, %56 : vector<16x16xf32>
    %cst_27 = arith.constant dense<0.000000e+00> : vector<16x16xf32>
    %58 = tpu.matmul %57, %45, %cst_27 {dimension_numbers = #tpu.dot_dimension_numbers<[1], [0], [0], [1], [0, 0, 1, 1], [], []>} : vector<16x16xf32>, vector<16x16xf32>, vector<16x16xf32> -> vector<16x16xf32>
    %59 = vector.extract_strided_slice %36 {offsets = [0, 0], sizes = [16, 32], strides = [1, 1]} : vector<32x32xf32> to vector<16x32xf32>
    %cst_28 = arith.constant dense<0.000000e+00> : vector<16x32xf32>
    %60 = tpu.matmul %58, %59, %cst_28 {dimension_numbers = #tpu.dot_dimension_numbers<[1], [0], [0], [1], [0, 0, 1, 1], [], []>} : vector<16x16xf32>, vector<16x32xf32>, vector<16x32xf32> -> vector<16x32xf32>
    %61 = vector.extract_strided_slice %42 {offsets = [0, 16], sizes = [16, 16], strides = [1, 1]} : vector<16x128xf32> to vector<16x16xf32>
    %62 = vector.extract_strided_slice %42 {offsets = [0, 48], sizes = [16, 16], strides = [1, 1]} : vector<16x128xf32> to vector<16x16xf32>
    %63 = vector.extract_strided_slice %42 {offsets = [0, 80], sizes = [16, 16], strides = [1, 1]} : vector<16x128xf32> to vector<16x16xf32>
    %cst_29 = arith.constant dense<0.000000e+00> : vector<16x16xf32>
    %64 = tpu.matmul %61, %62, %cst_29 {dimension_numbers = #tpu.dot_dimension_numbers<[1], [1], [0], [0], [0, 0, 1, 0], [], []>} : vector<16x16xf32>, vector<16x16xf32>, vector<16x16xf32> -> vector<16x16xf32>
    %65 = arith.addf %64, %10 : vector<16x16xf32>
    %cst_30 = arith.constant dense<0xFF800000> : vector<16xf32>
    %66 = vector.multi_reduction <maximumf>, %65, %cst_30 [1] : vector<16x16xf32> to vector<16xf32>
    %67 = vector.shape_cast %66 : vector<16xf32> to vector<16x1xf32>
    %68 = vector.broadcast %67 : vector<16x1xf32> to vector<16x16xf32>
    %69 = arith.subf %65, %68 : vector<16x16xf32>
    %70 = math.exp %69 : vector<16x16xf32>
    %cst_31 = arith.constant dense<0.000000e+00> : vector<16xf32>
    %71 = vector.multi_reduction <add>, %70, %cst_31 [1] : vector<16x16xf32> to vector<16xf32>
    %72 = vector.shape_cast %71 : vector<16xf32> to vector<16x1xf32>
    %73 = tpu.reciprocal %72 {approx = true} : vector<16x1xf32> -> vector<16x1xf32>
    %74 = vector.broadcast %73 : vector<16x1xf32> to vector<16x16xf32>
    %75 = arith.mulf %70, %74 : vector<16x16xf32>
    %cst_32 = arith.constant dense<0.000000e+00> : vector<16x16xf32>
    %76 = tpu.matmul %75, %63, %cst_32 {dimension_numbers = #tpu.dot_dimension_numbers<[1], [0], [0], [1], [0, 0, 1, 1], [], []>} : vector<16x16xf32>, vector<16x16xf32>, vector<16x16xf32> -> vector<16x16xf32>
    %77 = vector.extract_strided_slice %36 {offsets = [16, 0], sizes = [16, 32], strides = [1, 1]} : vector<32x32xf32> to vector<16x32xf32>
    %cst_33 = arith.constant dense<0.000000e+00> : vector<16x32xf32>
    %78 = tpu.matmul %76, %77, %cst_33 {dimension_numbers = #tpu.dot_dimension_numbers<[1], [0], [0], [1], [0, 0, 1, 1], [], []>} : vector<16x16xf32>, vector<16x32xf32>, vector<16x32xf32> -> vector<16x32xf32>
    %79 = arith.addf %60, %78 : vector<16x32xf32>
    %80 = vector.extract_strided_slice %34 {offsets = [1, 0], sizes = [1, 32], strides = [1, 1]} : vector<8x128xf32> to vector<1x32xf32>
    %81 = vector.broadcast %80 : vector<1x32xf32> to vector<16x32xf32>
    %82 = arith.addf %79, %81 : vector<16x32xf32>
    %83 = arith.addf %32, %82 : vector<16x32xf32>
    %84 = vector.extract_strided_slice %34 {offsets = [2, 0], sizes = [1, 32], strides = [1, 1]} : vector<8x128xf32> to vector<1x32xf32>
    %85 = vector.extract_strided_slice %34 {offsets = [3, 0], sizes = [1, 32], strides = [1, 1]} : vector<8x128xf32> to vector<1x32xf32>
    %cst_34 = arith.constant dense<0.000000e+00> : vector<16xf32>
    %86 = vector.multi_reduction <add>, %83, %cst_34 [1] : vector<16x32xf32> to vector<16xf32>
    %87 = vector.shape_cast %86 : vector<16xf32> to vector<16x1xf32>
    %cst_35 = arith.constant 3.200000e+01 : f32
    %88 = vector.broadcast %cst_35 : f32 to vector<16x1xf32>
    %89 = arith.divf %87, %88 : vector<16x1xf32>
    %90 = vector.broadcast %89 : vector<16x1xf32> to vector<16x32xf32>
    %91 = arith.subf %83, %90 : vector<16x32xf32>
    %92 = arith.mulf %91, %91 : vector<16x32xf32>
    %cst_36 = arith.constant dense<0.000000e+00> : vector<16xf32>
    %93 = vector.multi_reduction <add>, %92, %cst_36 [1] : vector<16x32xf32> to vector<16xf32>
    %94 = vector.shape_cast %93 : vector<16xf32> to vector<16x1xf32>
    %cst_37 = arith.constant 3.200000e+01 : f32
    %95 = vector.broadcast %cst_37 : f32 to vector<16x1xf32>
    %96 = arith.divf %94, %95 : vector<16x1xf32>
    %cst_38 = arith.constant 9.99999996E-13 : f32
    %97 = vector.broadcast %cst_38 : f32 to vector<16x1xf32>
    %98 = arith.addf %96, %97 : vector<16x1xf32>
    %99 = math.rsqrt %98 : vector<16x1xf32>
    %100 = vector.broadcast %99 : vector<16x1xf32> to vector<16x32xf32>
    %101 = arith.mulf %91, %100 : vector<16x32xf32>
    %102 = vector.broadcast %84 : vector<1x32xf32> to vector<16x32xf32>
    %103 = arith.mulf %101, %102 : vector<16x32xf32>
    %104 = vector.broadcast %85 : vector<1x32xf32> to vector<16x32xf32>
    %105 = arith.addf %103, %104 : vector<16x32xf32>
    %c0_39 = arith.constant 0 : index
    %c0_40 = arith.constant 0 : index
    %c0_41 = arith.constant 0 : index
    %106 = vector.load %arg6[%c0_39, %c0_40, %c0_41] : memref<2x32x64xf32, #tpu.memory_space<vmem>>, vector<1x32x64xf32>
    %107 = vector.shape_cast %106 : vector<1x32x64xf32> to vector<32x64xf32>
    %cst_42 = arith.constant dense<0.000000e+00> : vector<16x64xf32>
    %108 = tpu.matmul %105, %107, %cst_42 {dimension_numbers = #tpu.dot_dimension_numbers<[1], [0], [0], [1], [0, 0, 1, 1], [], []>} : vector<16x32xf32>, vector<32x64xf32>, vector<16x64xf32> -> vector<16x64xf32>
    %109 = vector.extract_strided_slice %34 {offsets = [4, 0], sizes = [1, 64], strides = [1, 1]} : vector<8x128xf32> to vector<1x64xf32>
    %110 = vector.broadcast %109 : vector<1x64xf32> to vector<16x64xf32>
    %111 = arith.addf %108, %110 : vector<16x64xf32>
    %112 = arith.mulf %111, %111 : vector<16x64xf32>
    %113 = arith.mulf %111, %112 : vector<16x64xf32>
    %cst_43 = arith.constant 4.471500e-02 : f32
    %114 = vector.broadcast %cst_43 : f32 to vector<16x64xf32>
    %115 = arith.mulf %114, %113 : vector<16x64xf32>
    %116 = arith.addf %111, %115 : vector<16x64xf32>
    %cst_44 = arith.constant 0.797884583 : f32
    %117 = vector.broadcast %cst_44 : f32 to vector<16x64xf32>
    %118 = arith.mulf %117, %116 : vector<16x64xf32>
    %119 = math.tanh %118 : vector<16x64xf32>
    %cst_45 = arith.constant 1.000000e+00 : f32
    %120 = vector.broadcast %cst_45 : f32 to vector<16x64xf32>
    %121 = arith.addf %120, %119 : vector<16x64xf32>
    %cst_46 = arith.constant 5.000000e-01 : f32
    %122 = vector.broadcast %cst_46 : f32 to vector<16x64xf32>
    %123 = arith.mulf %122, %121 : vector<16x64xf32>
    %124 = arith.mulf %111, %123 : vector<16x64xf32>
    %c0_47 = arith.constant 0 : index
    %c0_48 = arith.constant 0 : index
    %c0_49 = arith.constant 0 : index
    %125 = vector.load %arg7[%c0_47, %c0_48, %c0_49] : memref<2x64x32xf32, #tpu.memory_space<vmem>>, vector<1x64x32xf32>
    %126 = vector.shape_cast %125 : vector<1x64x32xf32> to vector<64x32xf32>
    %cst_50 = arith.constant dense<0.000000e+00> : vector<16x32xf32>
    %127 = tpu.matmul %124, %126, %cst_50 {dimension_numbers = #tpu.dot_dimension_numbers<[1], [0], [0], [1], [0, 0, 1, 1], [], []>} : vector<16x64xf32>, vector<64x32xf32>, vector<16x32xf32> -> vector<16x32xf32>
    %128 = vector.extract_strided_slice %34 {offsets = [5, 0], sizes = [1, 32], strides = [1, 1]} : vector<8x128xf32> to vector<1x32xf32>
    %129 = vector.broadcast %128 : vector<1x32xf32> to vector<16x32xf32>
    %130 = arith.addf %127, %129 : vector<16x32xf32>
    %131 = arith.addf %105, %130 : vector<16x32xf32>
    %132 = vector.extract_strided_slice %34 {offsets = [6, 0], sizes = [1, 32], strides = [1, 1]} : vector<8x128xf32> to vector<1x32xf32>
    %133 = vector.extract_strided_slice %34 {offsets = [7, 0], sizes = [1, 32], strides = [1, 1]} : vector<8x128xf32> to vector<1x32xf32>
    %cst_51 = arith.constant dense<0.000000e+00> : vector<16xf32>
    %134 = vector.multi_reduction <add>, %131, %cst_51 [1] : vector<16x32xf32> to vector<16xf32>
    %135 = vector.shape_cast %134 : vector<16xf32> to vector<16x1xf32>
    %cst_52 = arith.constant 3.200000e+01 : f32
    %136 = vector.broadcast %cst_52 : f32 to vector<16x1xf32>
    %137 = arith.divf %135, %136 : vector<16x1xf32>
    %138 = vector.broadcast %137 : vector<16x1xf32> to vector<16x32xf32>
    %139 = arith.subf %131, %138 : vector<16x32xf32>
    %140 = arith.mulf %139, %139 : vector<16x32xf32>
    %cst_53 = arith.constant dense<0.000000e+00> : vector<16xf32>
    %141 = vector.multi_reduction <add>, %140, %cst_53 [1] : vector<16x32xf32> to vector<16xf32>
    %142 = vector.shape_cast %141 : vector<16xf32> to vector<16x1xf32>
    %cst_54 = arith.constant 3.200000e+01 : f32
    %143 = vector.broadcast %cst_54 : f32 to vector<16x1xf32>
    %144 = arith.divf %142, %143 : vector<16x1xf32>
    %cst_55 = arith.constant 9.99999996E-13 : f32
    %145 = vector.broadcast %cst_55 : f32 to vector<16x1xf32>
    %146 = arith.addf %144, %145 : vector<16x1xf32>
    %147 = math.rsqrt %146 : vector<16x1xf32>
    %148 = vector.broadcast %147 : vector<16x1xf32> to vector<16x32xf32>
    %149 = arith.mulf %139, %148 : vector<16x32xf32>
    %150 = vector.broadcast %132 : vector<1x32xf32> to vector<16x32xf32>
    %151 = arith.mulf %149, %150 : vector<16x32xf32>
    %152 = vector.broadcast %133 : vector<1x32xf32> to vector<16x32xf32>
    %153 = arith.addf %151, %152 : vector<16x32xf32>
    %c1 = arith.constant 1 : index
    %c0_56 = arith.constant 0 : index
    %c0_57 = arith.constant 0 : index
    %154 = vector.load %arg3[%c1, %c0_56, %c0_57] : memref<2x8x128xf32, #tpu.memory_space<vmem>>, vector<1x8x128xf32>
    %155 = vector.shape_cast %154 : vector<1x8x128xf32> to vector<8x128xf32>
    %c1_58 = arith.constant 1 : index
    %c0_59 = arith.constant 0 : index
    %c0_60 = arith.constant 0 : index
    %156 = vector.load %arg5[%c1_58, %c0_59, %c0_60] : memref<2x32x32xf32, #tpu.memory_space<vmem>>, vector<1x32x32xf32>
    %157 = vector.shape_cast %156 : vector<1x32x32xf32> to vector<32x32xf32>
    %c1_61 = arith.constant 1 : index
    %c0_62 = arith.constant 0 : index
    %c0_63 = arith.constant 0 : index
    %158 = vector.load %arg4[%c1_61, %c0_62, %c0_63] : memref<2x32x128xf32, #tpu.memory_space<vmem>>, vector<1x32x128xf32>
    %159 = vector.shape_cast %158 : vector<1x32x128xf32> to vector<32x128xf32>
    %cst_64 = arith.constant dense<0.000000e+00> : vector<16x128xf32>
    %160 = tpu.matmul %153, %159, %cst_64 {dimension_numbers = #tpu.dot_dimension_numbers<[1], [0], [0], [1], [0, 0, 1, 1], [], []>} : vector<16x32xf32>, vector<32x128xf32>, vector<16x128xf32> -> vector<16x128xf32>
    %161 = vector.extract_strided_slice %155 {offsets = [0, 0], sizes = [1, 128], strides = [1, 1]} : vector<8x128xf32> to vector<1x128xf32>
    %162 = vector.broadcast %161 : vector<1x128xf32> to vector<16x128xf32>
    %163 = arith.addf %160, %162 : vector<16x128xf32>
    %164 = vector.extract_strided_slice %163 {offsets = [0, 0], sizes = [16, 16], strides = [1, 1]} : vector<16x128xf32> to vector<16x16xf32>
    %165 = vector.extract_strided_slice %163 {offsets = [0, 32], sizes = [16, 16], strides = [1, 1]} : vector<16x128xf32> to vector<16x16xf32>
    %166 = vector.extract_strided_slice %163 {offsets = [0, 64], sizes = [16, 16], strides = [1, 1]} : vector<16x128xf32> to vector<16x16xf32>
    %cst_65 = arith.constant dense<0.000000e+00> : vector<16x16xf32>
    %167 = tpu.matmul %164, %165, %cst_65 {dimension_numbers = #tpu.dot_dimension_numbers<[1], [1], [0], [0], [0, 0, 1, 0], [], []>} : vector<16x16xf32>, vector<16x16xf32>, vector<16x16xf32> -> vector<16x16xf32>
    %168 = arith.addf %167, %10 : vector<16x16xf32>
    %cst_66 = arith.constant dense<0xFF800000> : vector<16xf32>
    %169 = vector.multi_reduction <maximumf>, %168, %cst_66 [1] : vector<16x16xf32> to vector<16xf32>
    %170 = vector.shape_cast %169 : vector<16xf32> to vector<16x1xf32>
    %171 = vector.broadcast %170 : vector<16x1xf32> to vector<16x16xf32>
    %172 = arith.subf %168, %171 : vector<16x16xf32>
    %173 = math.exp %172 : vector<16x16xf32>
    %cst_67 = arith.constant dense<0.000000e+00> : vector<16xf32>
    %174 = vector.multi_reduction <add>, %173, %cst_67 [1] : vector<16x16xf32> to vector<16xf32>
    %175 = vector.shape_cast %174 : vector<16xf32> to vector<16x1xf32>
    %176 = tpu.reciprocal %175 {approx = true} : vector<16x1xf32> -> vector<16x1xf32>
    %177 = vector.broadcast %176 : vector<16x1xf32> to vector<16x16xf32>
    %178 = arith.mulf %173, %177 : vector<16x16xf32>
    %cst_68 = arith.constant dense<0.000000e+00> : vector<16x16xf32>
    %179 = tpu.matmul %178, %166, %cst_68 {dimension_numbers = #tpu.dot_dimension_numbers<[1], [0], [0], [1], [0, 0, 1, 1], [], []>} : vector<16x16xf32>, vector<16x16xf32>, vector<16x16xf32> -> vector<16x16xf32>
    %180 = vector.extract_strided_slice %157 {offsets = [0, 0], sizes = [16, 32], strides = [1, 1]} : vector<32x32xf32> to vector<16x32xf32>
    %cst_69 = arith.constant dense<0.000000e+00> : vector<16x32xf32>
    %181 = tpu.matmul %179, %180, %cst_69 {dimension_numbers = #tpu.dot_dimension_numbers<[1], [0], [0], [1], [0, 0, 1, 1], [], []>} : vector<16x16xf32>, vector<16x32xf32>, vector<16x32xf32> -> vector<16x32xf32>
    %182 = vector.extract_strided_slice %163 {offsets = [0, 16], sizes = [16, 16], strides = [1, 1]} : vector<16x128xf32> to vector<16x16xf32>
    %183 = vector.extract_strided_slice %163 {offsets = [0, 48], sizes = [16, 16], strides = [1, 1]} : vector<16x128xf32> to vector<16x16xf32>
    %184 = vector.extract_strided_slice %163 {offsets = [0, 80], sizes = [16, 16], strides = [1, 1]} : vector<16x128xf32> to vector<16x16xf32>
    %cst_70 = arith.constant dense<0.000000e+00> : vector<16x16xf32>
    %185 = tpu.matmul %182, %183, %cst_70 {dimension_numbers = #tpu.dot_dimension_numbers<[1], [1], [0], [0], [0, 0, 1, 0], [], []>} : vector<16x16xf32>, vector<16x16xf32>, vector<16x16xf32> -> vector<16x16xf32>
    %186 = arith.addf %185, %10 : vector<16x16xf32>
    %cst_71 = arith.constant dense<0xFF800000> : vector<16xf32>
    %187 = vector.multi_reduction <maximumf>, %186, %cst_71 [1] : vector<16x16xf32> to vector<16xf32>
    %188 = vector.shape_cast %187 : vector<16xf32> to vector<16x1xf32>
    %189 = vector.broadcast %188 : vector<16x1xf32> to vector<16x16xf32>
    %190 = arith.subf %186, %189 : vector<16x16xf32>
    %191 = math.exp %190 : vector<16x16xf32>
    %cst_72 = arith.constant dense<0.000000e+00> : vector<16xf32>
    %192 = vector.multi_reduction <add>, %191, %cst_72 [1] : vector<16x16xf32> to vector<16xf32>
    %193 = vector.shape_cast %192 : vector<16xf32> to vector<16x1xf32>
    %194 = tpu.reciprocal %193 {approx = true} : vector<16x1xf32> -> vector<16x1xf32>
    %195 = vector.broadcast %194 : vector<16x1xf32> to vector<16x16xf32>
    %196 = arith.mulf %191, %195 : vector<16x16xf32>
    %cst_73 = arith.constant dense<0.000000e+00> : vector<16x16xf32>
    %197 = tpu.matmul %196, %184, %cst_73 {dimension_numbers = #tpu.dot_dimension_numbers<[1], [0], [0], [1], [0, 0, 1, 1], [], []>} : vector<16x16xf32>, vector<16x16xf32>, vector<16x16xf32> -> vector<16x16xf32>
    %198 = vector.extract_strided_slice %157 {offsets = [16, 0], sizes = [16, 32], strides = [1, 1]} : vector<32x32xf32> to vector<16x32xf32>
    %cst_74 = arith.constant dense<0.000000e+00> : vector<16x32xf32>
    %199 = tpu.matmul %197, %198, %cst_74 {dimension_numbers = #tpu.dot_dimension_numbers<[1], [0], [0], [1], [0, 0, 1, 1], [], []>} : vector<16x16xf32>, vector<16x32xf32>, vector<16x32xf32> -> vector<16x32xf32>
    %200 = arith.addf %181, %199 : vector<16x32xf32>
    %201 = vector.extract_strided_slice %155 {offsets = [1, 0], sizes = [1, 32], strides = [1, 1]} : vector<8x128xf32> to vector<1x32xf32>
    %202 = vector.broadcast %201 : vector<1x32xf32> to vector<16x32xf32>
    %203 = arith.addf %200, %202 : vector<16x32xf32>
    %204 = arith.addf %153, %203 : vector<16x32xf32>
    %205 = vector.extract_strided_slice %155 {offsets = [2, 0], sizes = [1, 32], strides = [1, 1]} : vector<8x128xf32> to vector<1x32xf32>
    %206 = vector.extract_strided_slice %155 {offsets = [3, 0], sizes = [1, 32], strides = [1, 1]} : vector<8x128xf32> to vector<1x32xf32>
    %cst_75 = arith.constant dense<0.000000e+00> : vector<16xf32>
    %207 = vector.multi_reduction <add>, %204, %cst_75 [1] : vector<16x32xf32> to vector<16xf32>
    %208 = vector.shape_cast %207 : vector<16xf32> to vector<16x1xf32>
    %cst_76 = arith.constant 3.200000e+01 : f32
    %209 = vector.broadcast %cst_76 : f32 to vector<16x1xf32>
    %210 = arith.divf %208, %209 : vector<16x1xf32>
    %211 = vector.broadcast %210 : vector<16x1xf32> to vector<16x32xf32>
    %212 = arith.subf %204, %211 : vector<16x32xf32>
    %213 = arith.mulf %212, %212 : vector<16x32xf32>
    %cst_77 = arith.constant dense<0.000000e+00> : vector<16xf32>
    %214 = vector.multi_reduction <add>, %213, %cst_77 [1] : vector<16x32xf32> to vector<16xf32>
    %215 = vector.shape_cast %214 : vector<16xf32> to vector<16x1xf32>
    %cst_78 = arith.constant 3.200000e+01 : f32
    %216 = vector.broadcast %cst_78 : f32 to vector<16x1xf32>
    %217 = arith.divf %215, %216 : vector<16x1xf32>
    %cst_79 = arith.constant 9.99999996E-13 : f32
    %218 = vector.broadcast %cst_79 : f32 to vector<16x1xf32>
    %219 = arith.addf %217, %218 : vector<16x1xf32>
    %220 = math.rsqrt %219 : vector<16x1xf32>
    %221 = vector.broadcast %220 : vector<16x1xf32> to vector<16x32xf32>
    %222 = arith.mulf %212, %221 : vector<16x32xf32>
    %223 = vector.broadcast %205 : vector<1x32xf32> to vector<16x32xf32>
    %224 = arith.mulf %222, %223 : vector<16x32xf32>
    %225 = vector.broadcast %206 : vector<1x32xf32> to vector<16x32xf32>
    %226 = arith.addf %224, %225 : vector<16x32xf32>
    %c1_80 = arith.constant 1 : index
    %c0_81 = arith.constant 0 : index
    %c0_82 = arith.constant 0 : index
    %227 = vector.load %arg6[%c1_80, %c0_81, %c0_82] : memref<2x32x64xf32, #tpu.memory_space<vmem>>, vector<1x32x64xf32>
    %228 = vector.shape_cast %227 : vector<1x32x64xf32> to vector<32x64xf32>
    %cst_83 = arith.constant dense<0.000000e+00> : vector<16x64xf32>
    %229 = tpu.matmul %226, %228, %cst_83 {dimension_numbers = #tpu.dot_dimension_numbers<[1], [0], [0], [1], [0, 0, 1, 1], [], []>} : vector<16x32xf32>, vector<32x64xf32>, vector<16x64xf32> -> vector<16x64xf32>
    %230 = vector.extract_strided_slice %155 {offsets = [4, 0], sizes = [1, 64], strides = [1, 1]} : vector<8x128xf32> to vector<1x64xf32>
    %231 = vector.broadcast %230 : vector<1x64xf32> to vector<16x64xf32>
    %232 = arith.addf %229, %231 : vector<16x64xf32>
    %233 = arith.mulf %232, %232 : vector<16x64xf32>
    %234 = arith.mulf %232, %233 : vector<16x64xf32>
    %cst_84 = arith.constant 4.471500e-02 : f32
    %235 = vector.broadcast %cst_84 : f32 to vector<16x64xf32>
    %236 = arith.mulf %235, %234 : vector<16x64xf32>
    %237 = arith.addf %232, %236 : vector<16x64xf32>
    %cst_85 = arith.constant 0.797884583 : f32
    %238 = vector.broadcast %cst_85 : f32 to vector<16x64xf32>
    %239 = arith.mulf %238, %237 : vector<16x64xf32>
    %240 = math.tanh %239 : vector<16x64xf32>
    %cst_86 = arith.constant 1.000000e+00 : f32
    %241 = vector.broadcast %cst_86 : f32 to vector<16x64xf32>
    %242 = arith.addf %241, %240 : vector<16x64xf32>
    %cst_87 = arith.constant 5.000000e-01 : f32
    %243 = vector.broadcast %cst_87 : f32 to vector<16x64xf32>
    %244 = arith.mulf %243, %242 : vector<16x64xf32>
    %245 = arith.mulf %232, %244 : vector<16x64xf32>
    %c1_88 = arith.constant 1 : index
    %c0_89 = arith.constant 0 : index
    %c0_90 = arith.constant 0 : index
    %246 = vector.load %arg7[%c1_88, %c0_89, %c0_90] : memref<2x64x32xf32, #tpu.memory_space<vmem>>, vector<1x64x32xf32>
    %247 = vector.shape_cast %246 : vector<1x64x32xf32> to vector<64x32xf32>
    %cst_91 = arith.constant dense<0.000000e+00> : vector<16x32xf32>
    %248 = tpu.matmul %245, %247, %cst_91 {dimension_numbers = #tpu.dot_dimension_numbers<[1], [0], [0], [1], [0, 0, 1, 1], [], []>} : vector<16x64xf32>, vector<64x32xf32>, vector<16x32xf32> -> vector<16x32xf32>
    %249 = vector.extract_strided_slice %155 {offsets = [5, 0], sizes = [1, 32], strides = [1, 1]} : vector<8x128xf32> to vector<1x32xf32>
    %250 = vector.broadcast %249 : vector<1x32xf32> to vector<16x32xf32>
    %251 = arith.addf %248, %250 : vector<16x32xf32>
    %252 = arith.addf %226, %251 : vector<16x32xf32>
    %253 = vector.extract_strided_slice %155 {offsets = [6, 0], sizes = [1, 32], strides = [1, 1]} : vector<8x128xf32> to vector<1x32xf32>
    %254 = vector.extract_strided_slice %155 {offsets = [7, 0], sizes = [1, 32], strides = [1, 1]} : vector<8x128xf32> to vector<1x32xf32>
    %cst_92 = arith.constant dense<0.000000e+00> : vector<16xf32>
    %255 = vector.multi_reduction <add>, %252, %cst_92 [1] : vector<16x32xf32> to vector<16xf32>
    %256 = vector.shape_cast %255 : vector<16xf32> to vector<16x1xf32>
    %cst_93 = arith.constant 3.200000e+01 : f32
    %257 = vector.broadcast %cst_93 : f32 to vector<16x1xf32>
    %258 = arith.divf %256, %257 : vector<16x1xf32>
    %259 = vector.broadcast %258 : vector<16x1xf32> to vector<16x32xf32>
    %260 = arith.subf %252, %259 : vector<16x32xf32>
    %261 = arith.mulf %260, %260 : vector<16x32xf32>
    %cst_94 = arith.constant dense<0.000000e+00> : vector<16xf32>
    %262 = vector.multi_reduction <add>, %261, %cst_94 [1] : vector<16x32xf32> to vector<16xf32>
    %263 = vector.shape_cast %262 : vector<16xf32> to vector<16x1xf32>
    %cst_95 = arith.constant 3.200000e+01 : f32
    %264 = vector.broadcast %cst_95 : f32 to vector<16x1xf32>
    %265 = arith.divf %263, %264 : vector<16x1xf32>
    %cst_96 = arith.constant 9.99999996E-13 : f32
    %266 = vector.broadcast %cst_96 : f32 to vector<16x1xf32>
    %267 = arith.addf %265, %266 : vector<16x1xf32>
    %268 = math.rsqrt %267 : vector<16x1xf32>
    %269 = vector.broadcast %268 : vector<16x1xf32> to vector<16x32xf32>
    %270 = arith.mulf %260, %269 : vector<16x32xf32>
    %271 = vector.broadcast %253 : vector<1x32xf32> to vector<16x32xf32>
    %272 = arith.mulf %270, %271 : vector<16x32xf32>
    %273 = vector.broadcast %254 : vector<1x32xf32> to vector<16x32xf32>
    %274 = arith.addf %272, %273 : vector<16x32xf32>
    %275 = vector.extract_strided_slice %274 {offsets = [0, 0], sizes = [2, 32], strides = [1, 1]} : vector<16x32xf32> to vector<2x32xf32>
    %c0_97 = arith.constant 0 : index
    %c0_98 = arith.constant 0 : index
    %c0_99 = arith.constant 0 : index
    %276 = vector.load %arg9[%c0_97, %c0_98, %c0_99] : memref<2x32x128xf32, #tpu.memory_space<vmem>>, vector<1x32x128xf32>
    %277 = vector.shape_cast %276 : vector<1x32x128xf32> to vector<32x128xf32>
    %278 = vector.extract_strided_slice %277 {offsets = [0, 0], sizes = [32, 32], strides = [1, 1]} : vector<32x128xf32> to vector<32x32xf32>
    %cst_100 = arith.constant dense<0.000000e+00> : vector<2x32xf32>
    %279 = tpu.matmul %275, %278, %cst_100 {dimension_numbers = #tpu.dot_dimension_numbers<[1], [0], [0], [1], [0, 0, 1, 1], [], []>} : vector<2x32xf32>, vector<32x32xf32>, vector<2x32xf32> -> vector<2x32xf32>
    %280 = vector.extract_strided_slice %1 {offsets = [2, 0], sizes = [1, 32], strides = [1, 1]} : vector<4x128xf32> to vector<1x32xf32>
    %281 = vector.broadcast %280 : vector<1x32xf32> to vector<2x32xf32>
    %282 = arith.addf %279, %281 : vector<2x32xf32>
    %283 = math.tanh %282 : vector<2x32xf32>
    %c1_101 = arith.constant 1 : index
    %c0_102 = arith.constant 0 : index
    %c0_103 = arith.constant 0 : index
    %284 = vector.load %arg9[%c1_101, %c0_102, %c0_103] : memref<2x32x128xf32, #tpu.memory_space<vmem>>, vector<1x32x128xf32>
    %285 = vector.shape_cast %284 : vector<1x32x128xf32> to vector<32x128xf32>
    %cst_104 = arith.constant dense<0.000000e+00> : vector<2x128xf32>
    %286 = tpu.matmul %283, %285, %cst_104 {dimension_numbers = #tpu.dot_dimension_numbers<[1], [0], [0], [1], [0, 0, 1, 1], [], []>} : vector<2x32xf32>, vector<32x128xf32>, vector<2x128xf32> -> vector<2x128xf32>
    %287 = vector.extract_strided_slice %1 {offsets = [3, 0], sizes = [1, 128], strides = [1, 1]} : vector<4x128xf32> to vector<1x128xf32>
    %288 = vector.broadcast %287 : vector<1x128xf32> to vector<2x128xf32>
    %289 = arith.addf %286, %288 : vector<2x128xf32>
    %c0_105 = arith.constant 0 : index
    %c0_106 = arith.constant 0 : index
    %290 = vector.load %arg11[%c0_105, %c0_106] : memref<2x128xf32, #tpu.memory_space<vmem>>, vector<2x128xf32>
    tpu.vector_store %arg11[%c0_105, %c0_106], %289 {strides = array<i32>} : memref<2x128xf32, #tpu.memory_space<vmem>>, vector<2x128xf32>,
    %c0_107 = arith.constant 0 : index
    %c0_108 = arith.constant 0 : index
    %291 = vector.load %arg10[%c0_107, %c0_108] : memref<2x128xf32, #tpu.memory_space<vmem>>, vector<2x128xf32>
    %292 = tpu.iota {dimensions = array<i32: 1>} : vector<2x128xi32>
    %c0_i32 = arith.constant 0 : i32
    %293 = vector.broadcast %c0_i32 : i32 to vector<2x128xi32>
    %294 = arith.cmpi sge, %292, %293 : vector<2x128xi32>
    %c3_i32 = arith.constant 3 : i32
    %295 = vector.broadcast %c3_i32 : i32 to vector<2x128xi32>
    %296 = arith.cmpi slt, %292, %295 : vector<2x128xi32>
    %297 = arith.andi %294, %296 : vector<2x128xi1>
    %cst_109 = arith.constant -1.000000e+30 : f32
    %298 = vector.broadcast %cst_109 : f32 to vector<2x128xf32>
    %299 = arith.select %297, %289, %298 : vector<2x128xi1>, vector<2x128xf32>
    %cst_110 = arith.constant dense<0xFF800000> : vector<2xf32>
    %300 = vector.multi_reduction <maximumf>, %299, %cst_110 [1] : vector<2x128xf32> to vector<2xf32>
    %301 = vector.shape_cast %300 : vector<2xf32> to vector<2x1xf32>
    %302 = vector.broadcast %301 : vector<2x1xf32> to vector<2x128xf32>
    %303 = arith.subf %299, %302 : vector<2x128xf32>
    %304 = math.exp %303 : vector<2x128xf32>
    %cst_111 = arith.constant 0.000000e+00 : f32
    %305 = vector.broadcast %cst_111 : f32 to vector<2x128xf32>
    %306 = arith.select %297, %304, %305 : vector<2x128xi1>, vector<2x128xf32>
    %cst_112 = arith.constant dense<0.000000e+00> : vector<2xf32>
    %307 = vector.multi_reduction <add>, %306, %cst_112 [1] : vector<2x128xf32> to vector<2xf32>
    %308 = vector.shape_cast %307 : vector<2xf32> to vector<2x1xf32>
    %309 = math.log %308 : vector<2x1xf32>
    %310 = arith.addf %301, %309 : vector<2x1xf32>
    %311 = arith.mulf %291, %289 : vector<2x128xf32>
    %cst_113 = arith.constant 0.000000e+00 : f32
    %312 = vector.broadcast %cst_113 : f32 to vector<2x128xf32>
    %313 = arith.select %297, %311, %312 : vector<2x128xi1>, vector<2x128xf32>
    %cst_114 = arith.constant dense<0.000000e+00> : vector<2xf32>
    %314 = vector.multi_reduction <add>, %313, %cst_114 [1] : vector<2x128xf32> to vector<2xf32>
    %315 = vector.shape_cast %314 : vector<2xf32> to vector<2x1xf32>
    %316 = arith.subf %310, %315 : vector<2x1xf32>
    %cst_115 = arith.constant dense<0.000000e+00> : vector<1xf32>
    %317 = vector.multi_reduction <add>, %316, %cst_115 [0] : vector<2x1xf32> to vector<1xf32>
    %318 = vector.shape_cast %317 : vector<1xf32> to vector<1x1xf32>
    %cst_116 = arith.constant 5.000000e-01 : f32
    %319 = vector.broadcast %cst_116 : f32 to vector<1x1xf32>
    %320 = arith.mulf %318, %319 : vector<1x1xf32>
    %c3_i32_117 = arith.constant 3 : i32
    %321 = vector.broadcast %c3_i32_117 : i32 to vector<2x128xi32>
    %322 = arith.cmpi sge, %292, %321 : vector<2x128xi32>
    %c10_i32 = arith.constant 10 : i32
    %323 = vector.broadcast %c10_i32 : i32 to vector<2x128xi32>
    %324 = arith.cmpi slt, %292, %323 : vector<2x128xi32>
    %325 = arith.andi %322, %324 : vector<2x128xi1>
    %cst_118 = arith.constant -1.000000e+30 : f32
    %326 = vector.broadcast %cst_118 : f32 to vector<2x128xf32>
    %327 = arith.select %325, %289, %326 : vector<2x128xi1>, vector<2x128xf32>
    %cst_119 = arith.constant dense<0xFF800000> : vector<2xf32>
    %328 = vector.multi_reduction <maximumf>, %327, %cst_119 [1] : vector<2x128xf32> to vector<2xf32>
    %329 = vector.shape_cast %328 : vector<2xf32> to vector<2x1xf32>
    %330 = vector.broadcast %329 : vector<2x1xf32> to vector<2x128xf32>
    %331 = arith.subf %327, %330 : vector<2x128xf32>
    %332 = math.exp %331 : vector<2x128xf32>
    %cst_120 = arith.constant 0.000000e+00 : f32
    %333 = vector.broadcast %cst_120 : f32 to vector<2x128xf32>
    %334 = arith.select %325, %332, %333 : vector<2x128xi1>, vector<2x128xf32>
    %cst_121 = arith.constant dense<0.000000e+00> : vector<2xf32>
    %335 = vector.multi_reduction <add>, %334, %cst_121 [1] : vector<2x128xf32> to vector<2xf32>
    %336 = vector.shape_cast %335 : vector<2xf32> to vector<2x1xf32>
    %337 = math.log %336 : vector<2x1xf32>
    %338 = arith.addf %329, %337 : vector<2x1xf32>
    %339 = arith.mulf %291, %289 : vector<2x128xf32>
    %cst_122 = arith.constant 0.000000e+00 : f32
    %340 = vector.broadcast %cst_122 : f32 to vector<2x128xf32>
    %341 = arith.select %325, %339, %340 : vector<2x128xi1>, vector<2x128xf32>
    %cst_123 = arith.constant dense<0.000000e+00> : vector<2xf32>
    %342 = vector.multi_reduction <add>, %341, %cst_123 [1] : vector<2x128xf32> to vector<2xf32>
    %343 = vector.shape_cast %342 : vector<2xf32> to vector<2x1xf32>
    %344 = arith.subf %338, %343 : vector<2x1xf32>
    %cst_124 = arith.constant dense<0.000000e+00> : vector<1xf32>
    %345 = vector.multi_reduction <add>, %344, %cst_124 [0] : vector<2x1xf32> to vector<1xf32>
    %346 = vector.shape_cast %345 : vector<1xf32> to vector<1x1xf32>
    %cst_125 = arith.constant 5.000000e-01 : f32
    %347 = vector.broadcast %cst_125 : f32 to vector<1x1xf32>
    %348 = arith.mulf %346, %347 : vector<1x1xf32>
    %349 = arith.addf %320, %348 : vector<1x1xf32>
    %c10_i32_126 = arith.constant 10 : i32
    %350 = vector.broadcast %c10_i32_126 : i32 to vector<2x128xi32>
    %351 = arith.cmpi sge, %292, %350 : vector<2x128xi32>
    %c15_i32 = arith.constant 15 : i32
    %352 = vector.broadcast %c15_i32 : i32 to vector<2x128xi32>
    %353 = arith.cmpi slt, %292, %352 : vector<2x128xi32>
    %354 = arith.andi %351, %353 : vector<2x128xi1>
    %cst_127 = arith.constant -1.000000e+30 : f32
    %355 = vector.broadcast %cst_127 : f32 to vector<2x128xf32>
    %356 = arith.select %354, %289, %355 : vector<2x128xi1>, vector<2x128xf32>
    %cst_128 = arith.constant dense<0xFF800000> : vector<2xf32>
    %357 = vector.multi_reduction <maximumf>, %356, %cst_128 [1] : vector<2x128xf32> to vector<2xf32>
    %358 = vector.shape_cast %357 : vector<2xf32> to vector<2x1xf32>
    %359 = vector.broadcast %358 : vector<2x1xf32> to vector<2x128xf32>
    %360 = arith.subf %356, %359 : vector<2x128xf32>
    %361 = math.exp %360 : vector<2x128xf32>
    %cst_129 = arith.constant 0.000000e+00 : f32
    %362 = vector.broadcast %cst_129 : f32 to vector<2x128xf32>
    %363 = arith.select %354, %361, %362 : vector<2x128xi1>, vector<2x128xf32>
    %cst_130 = arith.constant dense<0.000000e+00> : vector<2xf32>
    %364 = vector.multi_reduction <add>, %363, %cst_130 [1] : vector<2x128xf32> to vector<2xf32>
    %365 = vector.shape_cast %364 : vector<2xf32> to vector<2x1xf32>
    %366 = math.log %365 : vector<2x1xf32>
    %367 = arith.addf %358, %366 : vector<2x1xf32>
    %368 = arith.mulf %291, %289 : vector<2x128xf32>
    %cst_131 = arith.constant 0.000000e+00 : f32
    %369 = vector.broadcast %cst_131 : f32 to vector<2x128xf32>
    %370 = arith.select %354, %368, %369 : vector<2x128xi1>, vector<2x128xf32>
    %cst_132 = arith.constant dense<0.000000e+00> : vector<2xf32>
    %371 = vector.multi_reduction <add>, %370, %cst_132 [1] : vector<2x128xf32> to vector<2xf32>
    %372 = vector.shape_cast %371 : vector<2xf32> to vector<2x1xf32>
    %373 = arith.subf %367, %372 : vector<2x1xf32>
    %cst_133 = arith.constant dense<0.000000e+00> : vector<1xf32>
    %374 = vector.multi_reduction <add>, %373, %cst_133 [0] : vector<2x1xf32> to vector<1xf32>
    %375 = vector.shape_cast %374 : vector<1xf32> to vector<1x1xf32>
    %cst_134 = arith.constant 5.000000e-01 : f32
    %376 = vector.broadcast %cst_134 : f32 to vector<1x1xf32>
    %377 = arith.mulf %375, %376 : vector<1x1xf32>
    %378 = arith.addf %349, %377 : vector<1x1xf32>
    %c0_135 = arith.constant 0 : index
    %c0_136 = arith.constant 0 : index
    %379 = vector.load %arg12[%c0_135, %c0_136] : memref<1x1xf32, #tpu.memory_space<vmem>>, vector<1x1xf32>
    tpu.vector_store %arg12[%c0_135, %c0_136], %378 {strides = array<i32>} : memref<1x1xf32, #tpu.memory_space<vmem>>, vector<1x1xf32>,
    return
  }
}

</mosaic_0001>

<bundles_post_ra>
// kernel: _forward_core.1
= control target key start
LH: loop header
LB: loop body
LE: loop exit
PB: predicated region body
PF: predicated region fallthrough
CT: control target
= control target key end

     0   :  { %18 = vsyncpa [#allocation3], 0  ;;  %vm87_vm0 = vcmask 261120   ;;  %s1992_s0 = inlined_call_operand.vmem [shape: f32[16,32], index: 0, kind: input, shape index: {}]   ;;  %s1993_s1 = inlined_call_operand.vmem [shape: f32[16,2], index: 1, kind: input, shape index: {}]   ;;  %s1994_s2 = inlined_call_operand.vmem [shape: f32[1,16], index: 2, kind: input, shape index: {}]   ;;  %s1995_s3 = inlined_call_operand.vmem [shape: f32[2,8,128], index: 3, kind: input, shape index: {}]   ;;  %s1996_s4 = inlined_call_operand.vmem [shape: f32[2,32,128], index: 4, kind: input, shape index: {}]   ;;  %s1997_s5 = inlined_call_operand.vmem [shape: f32[2,32,32], index: 5, kind: input, shape index: {}]   ;;  %s1998_s6 = inlined_call_operand.vmem [shape: f32[2,32,64], index: 6, kind: input, shape index: {}]   ;;  %s1999_s7 = inlined_call_operand.vmem [shape: f32[2,64,32], index: 7, kind: input, shape index: {}]   ;;  %s2000_s8 = inlined_call_operand.vmem [shape: f32[4,128], index: 8, kind: input, shape index: {}]   ;;  %s2001_s9 = inlined_call_operand.vmem [shape: f32[2,32,128], index: 9, kind: input, shape index: {}]   ;;  %s2002_s10 = inlined_call_operand.vmem [shape: f32[2,128], index: 10, kind: input, shape index: {}]   ;;  %s2003_s11 = inlined_call_operand.hbm [shape: f32[2,128], index: 11, kind: output, shape index: {0}]   ;;  %s2004_s12 = inlined_call_operand.hbm [shape: f32[1,1], index: 12, kind: output, shape index: {1}]  }
   0x1   :  { %v42_v0 = vld [vmem:[%s1992_s0] sm:$0xff] }
   0x2   :  { %v88_v1 = vsel %vm87_vm0, %v42_v0, 0.0 }
   0x3   :  { %19 = vsyncpa [#allocation5], 0  ;;  %89 = vadd.xlane.f32.xlu0 %v88_v1  ;;  %v43_v2 = vld [vmem:[%s1992_s0 + $0x8] sm:$0xff]  ;;  %v1517_v4 = vmov 32.0   ;;  %v153_v21 = vld [vmem:[%s1996_s4 + $0x18] sm:$0xff]  ;;  %s1518_s18 = smov 96  }
   0x4   :  { %v91_v3 = vsel %vm87_vm0, %v43_v2, 0.0  ;;  %1390 = vrcp.f32 %v1517_v4  ;;  %173 = vmatpush.msra.mxu1 %v153_v21  ;;  %v152_v22 = vld [vmem:[%s1996_s4 + $0x10] sm:$0xff]  ;;  %v151_v23 = vld [vmem:[%s1996_s4 + $0x8] sm:$0xff]  ;;  %v150_v24 = vld [vmem:[%s1996_s4] sm:$0xff]  ;;  %vm47_vm8 = vcmask 15360   ;;  %vm190_vm9 = vcmask 130048  }
   0x5   :  { %v44_v36 = vld [vmem:[%s2000_s8] sm:$0xf]  ;;  %v46_v60 = vld [vmem:[%s1993_s1 + $0x8] sm:$0xff]  ;;  %s1521_s0 = smov 112   ;;  %s1522_s29 = smov 48  }
   0x6   :  { %174 = vmatpush.msra.mxu1 %v152_v22  ;;  %v139_v40 = vperm.slane %v44_v36, 0  ;;  %v142_v44 = vperm.slane %v44_v36, 1  ;;  %v1632_v55 = vld [vmem:[%s1995_s3] sm:$0xff]  ;;  %1284 = vmatpush.xpose.msk.msra.mxu0 %vm47_vm8, %v46_v60  ;;  %s1270_s17 = sshll.u32 %s2004_s12, 4  ;;  %s1271_s17 = int_to_ptr.hbm [resolvable:$true] %s1270_s17 }
   0x7   :  { %v154_v56 = vperm.slane %v1632_v55, 0  ;;  %v45_v61 = vld [vmem:[%s1993_s1] sm:$0xff]  ;;  %s1519_s1 = smov 64  }
   0x8   :  { %175 = vmatpush.msra.mxu1 %v151_v23  ;;  %v1389_v1 = vld [vmem:[%s1994_s2] ss:$0 sm:$0xff]  ;;  %s1520_s2 = smov 80  }
   0xa   :  { %v1391_v5 = vpop.eup %1390  ;;  %176 = vmatpush.msra.mxu1 %v150_v24  ;;  %1285 = vmatpush.xpose.msk.msra.mxu0 %vm47_vm8, %v45_v61 }
   0xb   :  { %92 = vadd.xlane.f32.xlu0 %v91_v3  ;;  %v95_v6 = vmul.f32 32.0, %v1391_v5  ;;  %vm99_vm1 = vweird.f32 %v1391_v5 }
   0xd   :  { %v96_v7 = vsub.f32 1.0, %v95_v6  ;;  %1286 = vmatmul.msk.f32.vlgmr.msra.gmra.mxu0 %vm47_vm8, %v45_v61 }
   0xf   :  { %v97_v8 = vmul.f32 %v1391_v5, %v96_v7 }
  0x11   :  { %v98_v9 = vadd.f32 %v1391_v5, %v97_v8 }
  0x13   :  { %v1598_v10 = vsel %vm99_vm1, %v1391_v5, %v98_v9  ;;  %vm549_vm1 = vcmask 523264  }
  0x15   :  { %1287 = vmatmul.msk.f32.gmra.mxu0 %vm47_vm8, %v46_v60 }
  0x76   :  { %v90_v11 = vpop.xlane.xlu0 %89 }
  0x77   :  { %v101_v12 = vmul.f32 %v1598_v10, %v90_v11 }
  0x79   :  { %v103_v13 = vsub.f32 %v42_v0, %v101_v12 }
  0x7b   :  { %v105_v14 = vmul.f32 %v103_v13, %v103_v13 }
  0x7d   :  { %v107_v15 = vsel %vm87_vm0, %v105_v14, 0.0 }
  0x7e   :  { %108 = vadd.xlane.f32.xlu1 %v107_v15  ;;  %v93_v16 = vpop.xlane.xlu0 %92 }
  0x7f   :  { %v102_v17 = vmul.f32 %v1598_v10, %v93_v16 }
  0x81   :  { %v104_v18 = vsub.f32 %v43_v2, %v102_v17 }
  0x83   :  { %v106_v19 = vmul.f32 %v104_v18, %v104_v18 }
  0x85   :  { %v110_v20 = vsel %vm87_vm0, %v106_v19, 0.0 }
  0x86   :  { %111 = vadd.xlane.f32.xlu1 %v110_v20 }
  0x8a   :  { %v71_v0 = vpop.f32.mrf.mxu0 }
  0x8b   :  { %v81_v2 = vmul.f32 %v1389_v1, %v71_v0 }
  0x8d   :  { %v1288_v3 = vadd.f32 -1.0, %v81_v2  ;;  %v149_v2 = vld [vmem:[%s1997_s5 + $0x18] sm:$0xff] }
  0x8e   :  { %395 = vmatpush.msrb.mxu1 %v149_v2 }
  0x8f   :  { %v1654_v5 = vmul.f32 1e+09, %v1288_v3 }
  0x92   :  { %v74_v4 = vpop.f32.mrf.mxu0 }
  0x93   :  { %v82_v6 = vmul.f32 %v1389_v1, %v74_v4 }
  0x95   :  { %v1289_v9 = vadd.f32 -1.0, %v82_v6 }
  0x97   :  { %v1658_v12 = vmul.f32 1e+09, %v1289_v9 }
  0xf1   :  { %v109_v25 = vpop.xlane.xlu1 %108 }
  0xf2   :  { %v113_v26 = vmul.f32 %v109_v25, %v1598_v10 }
  0xf4   :  { %v115_v27 = vadd.f32 1e-12, %v113_v26 }
  0xf6   :  { %1392 = vrsqrt.f32 %v115_v27  ;;  %vm123_vm3 = vweird.f32 %v115_v27 }
  0xf9   :  { %v112_v28 = vpop.xlane.xlu1 %111 }
  0xfa   :  { %v114_v29 = vmul.f32 %v112_v28, %v1598_v10 }
  0xfc   :  { %v1393_v30 = vpop.eup %1392  ;;  %v116_v31 = vadd.f32 1e-12, %v114_v29 }
  0xfd   :  { %v118_v32 = vmul.f32 %v1393_v30, %v115_v27  ;;  %vm124_vm2 = vweird.f32 %v1393_v30 }
  0xfe   :  { %1394 = vrsqrt.f32 %v116_v31  ;;  %vm125_vm4 = vmor %vm123_vm3, %vm124_vm2  ;;  %vm133_vm6 = vweird.f32 %v116_v31 }
  0xff   :  { %v119_v33 = vmul.f32 %v1393_v30, %v118_v32 }
 0x101   :  { %v120_v34 = vmul.f32 0.5, %v119_v33  ;;  %v147_v33 = vld [vmem:[%s1997_s5 + $0x8] sm:$0xff] }
 0x103   :  { %v121_v35 = vsub.f32 1.5, %v120_v34 }
 0x104   :  { %v1395_v37 = vpop.eup %1394 }
 0x105   :  { %v122_v38 = vmul.f32 %v1393_v30, %v121_v35  ;;  %v128_v39 = vmul.f32 %v1395_v37, %v116_v31  ;;  %vm134_vm5 = vweird.f32 %v1395_v37 }
 0x106   :  { %vm135_vm7 = vmor %vm133_vm6, %vm134_vm5 }
 0x107   :  { %v126_v41 = vsel %vm125_vm4, %v1393_v30, %v122_v38  ;;  %v129_v42 = vmul.f32 %v1395_v37, %v128_v39 }
 0x108   :  { %v137_v43 = vmul.f32 %v126_v41, %v103_v13  ;;  %v146_v41 = vld [vmem:[%s1997_s5] sm:$0xff] }
 0x109   :  { %v130_v45 = vmul.f32 0.5, %v129_v42 }
 0x10a   :  { %v140_v46 = vmul.f32 %v139_v40, %v137_v43 }
 0x10b   :  { %v131_v47 = vsub.f32 1.5, %v130_v45 }
 0x10c   :  { %v1621_v48 = vadd.f32 %v142_v44, %v140_v46 }
 0x10d   :  { %v132_v49 = vmul.f32 %v1395_v37, %v131_v47 }
 0x10e   :  { %1290 = vmatmul.msk.f32.vlgmr.msra.gmra.mxu1 %vm87_vm0, %v1621_v48 }
 0x10f   :  { %v136_v50 = vsel %vm135_vm7, %v1395_v37, %v132_v49 }
 0x110   :  { %v138_v51 = vmul.f32 %v136_v50, %v104_v18 }
 0x112   :  { %v141_v52 = vmul.f32 %v139_v40, %v138_v51 }
 0x114   :  { %v1625_v53 = vadd.f32 %v142_v44, %v141_v52 }
 0x116   :  { %1291 = vmatmul.msk.f32.gmra.mxu1 %vm87_vm0, %v1625_v53 }
 0x18b   :  { %v178_v54 = vpop.f32.mrf.mxu1 }
 0x18c   :  { %v179_v59 = vadd.f32 %v178_v54, %v154_v56 }
 0x193   :  { %v181_v57 = vpop.f32.mrf.mxu1 }
 0x194   :  { %v1635_v58 = vadd.f32 %v181_v57, %v154_v56 }
 0x196   :  { %188 = vrot.lane.b32.xlu2 %v1635_v58, %s1518_s18  ;;  %v1369_v16 = vpack.i.bf16 %v179_v59, %v1635_v58 }
 0x19e   :  { %186 = vrot.lane.b32.xlu2 %v179_v59, %s1518_s18 }
 0x1f0   :  { %v189_v62 = vpop.permute.xlu2 %188 }
 0x1f1   :  { %1292 = vmatpush.xpose.msk.msra.mxu2 %vm190_vm9, %v189_v62 }
 0x1f8   :  { %v187_v63 = vpop.permute.xlu2 %186 }
 0x1f9   :  { %1293 = vmatpush.xpose.msk.msra.mxu2 %vm190_vm9, %v187_v63 }
 0x1fc   :  { %1294 = vmatmul.msk.f32.vlgmr.msra.gmra.mxu2 %vm190_vm9, %v179_v59 }
 0x1fd   :  { %424 = vmatpush.msrb.mxu2 %v147_v33 }
 0x1ff   :  { %425 = vmatpush.msrb.mxu2 %v146_v41 }
 0x204   :  { %1295 = vmatmul.msk.f32.gmra.mxu2 %vm190_vm9, %v1635_v58 }
 0x27f   :  { %v216_v7 = vpop.f32.mrf.mxu2 }
 0x280   :  { %v217_v8 = vadd.f32 %v216_v7, %v1654_v5 }
 0x282   :  { %v222_v11 = vsel %vm190_vm9, %v217_v8, -inf }
 0x283   :  { %223 = vmax.xlane.f32.xlu0 %v222_v11  ;;  %v148_v11 = vld [vmem:[%s1997_s5 + $0x10] sm:$0xff] }
 0x284   :  { %396 = vmatpush.msrb.mxu1 %v148_v11  ;;  %v545_v11 = vld [vmem:[%s1999_s7 + $0x28] sm:$0xff] }
 0x287   :  { %v219_v13 = vpop.f32.mrf.mxu2 }
 0x288   :  { %v220_v14 = vadd.f32 %v219_v13, %v1658_v12 }
 0x28a   :  { %v225_v15 = vsel %vm190_vm9, %v220_v14, -inf }
 0x28b   :  { %226 = vmax.xlane.f32.xlu1 %v225_v15 }
 0x297   :  { %1370 = vrot.lane.b32.xlu0 %v1369_v16, %s1519_s1 }
 0x29f   :  { %283 = vrot.lane.b32.xlu0 %v179_v59, %s1520_s2 }
 0x2a4   :  { %285 = vrot.lane.b32.xlu1 %v1635_v58, %s1520_s2 }
 0x2a7   :  { %279 = vrot.lane.b32.xlu0 %v179_v59, %s1521_s0 }
 0x2f6   :  { %v224_v17 = vpop.xlane.xlu0 %223 }
 0x2f7   :  { %v228_v18 = vsub.f32 %v217_v8, %v224_v17 }
 0x2f9   :  { %v230_v19 = vmul.f32 1.442695, %v228_v18 }
 0x2fb   :  { %1396 = vpow2.f32 %v230_v19 }
 0x2fe   :  { %v227_v20 = vpop.xlane.xlu1 %226 }
 0x2ff   :  { %v229_v21 = vsub.f32 %v220_v14, %v227_v20 }
 0x301   :  { %v1397_v22 = vpop.eup %1396  ;;  %v232_v23 = vmul.f32 1.442695, %v229_v21 }
 0x302   :  { %v234_v24 = vsel %vm190_vm9, %v1397_v22, 0.0 }
 0x303   :  { %1398 = vpow2.f32 %v232_v23  ;;  %235 = vadd.xlane.f32.xlu2 %v234_v24 }
 0x309   :  { %v1399_v25 = vpop.eup %1398  ;;  %v1371_v26 = vpop.permute.xlu0 %1370 }
 0x30a   :  { %v237_v27 = vsel %vm190_vm9, %v1399_v25, 0.0  ;;  %v1372_v28 = vunpack.i.l.bf16 %v1371_v26  ;;  %v1373_v29 = vunpack.i.h.bf16 %v1371_v26 }
 0x30b   :  { %238 = vadd.xlane.f32.xlu1 %v237_v27 }
 0x30c   :  { %270 = vmatpush.msra.mxu3 %v1372_v28 }
 0x30e   :  { %271 = vmatpush.msra.mxu3 %v1373_v29 }
 0x311   :  { %v284_v31 = vpop.permute.xlu0 %283 }
 0x316   :  { %v286_v30 = vpop.permute.xlu1 %285 }
 0x317   :  { %1298 = vmatpush.xpose.msk.msrb.mxu3 %vm190_vm9, %v286_v30 }
 0x319   :  { %v280_v39 = vpop.permute.xlu0 %279 }
 0x31b   :  { %1299 = vmatpush.xpose.msk.msrb.mxu3 %vm190_vm9, %v284_v31 }
 0x324   :  { %281 = vrot.lane.b32.xlu1 %v1635_v58, %s1521_s0 }
 0x376   :  { %v236_v32 = vpop.xlane.xlu2 %235 }
 0x377   :  { %1400 = vrcp.f32 %v236_v32 }
 0x37d   :  { %v1401_v34 = vpop.eup %1400 }
 0x37e   :  { %v239_v35 = vpop.xlane.xlu1 %238  ;;  %v242_v36 = vmul.f32 %v1401_v34, %v1397_v22 }
 0x37f   :  { %1402 = vrcp.f32 %v239_v35 }
 0x380   :  { %1296 = vmatmul.msk.f32.vlgmr.msra.gmra.mxu3 %vm190_vm9, %v242_v36 }
 0x385   :  { %v1403_v37 = vpop.eup %1402 }
 0x386   :  { %v243_v38 = vmul.f32 %v1403_v37, %v1399_v25  ;;  %v490_v37 = vld [vmem:[%s1998_s6 + $0x10] sm:$0xff] }
 0x388   :  { %1297 = vmatmul.msk.f32.gmra.mxu3 %vm190_vm9, %v243_v38  ;;  %v489_v38 = vld [vmem:[%s1998_s6 + $0x8] sm:$0xff] }
 0x390   :  { %1300 = vmatmul.msk.f32.vlgmr.msrb.gmra.mxu3 %vm190_vm9, %v280_v39  ;;  %v488_v39 = vld [vmem:[%s1998_s6] sm:$0xff] }
 0x396   :  { %v282_v40 = vpop.permute.xlu1 %281 }
 0x398   :  { %1301 = vmatmul.msk.f32.gmra.mxu3 %vm190_vm9, %v282_v40 }
 0x403   :  { %v273_v42 = vpop.f32.mrf.mxu3 }
 0x404   :  { %1306 = vmatmul.msk.f32.vlgmr.msrb.gmra.mxu2 %vm190_vm9, %v273_v42 }
 0x40b   :  { %v276_v43 = vpop.f32.mrf.mxu3 }
 0x40c   :  { %1307 = vmatmul.msk.f32.gmra.mxu2 %vm190_vm9, %v276_v43 }
 0x413   :  { %v312_v44 = vpop.f32.mrf.mxu3 }
 0x414   :  { %v313_v45 = vadd.f32 %v312_v44, %v1654_v5 }
 0x416   :  { %v318_v46 = vsel %vm190_vm9, %v313_v45, -inf }
 0x417   :  { %319 = vmax.xlane.f32.xlu2 %v318_v46 }
 0x41b   :  { %v315_v47 = vpop.f32.mrf.mxu3 }
 0x41c   :  { %v316_v49 = vadd.f32 %v315_v47, %v1658_v12 }
 0x41e   :  { %v321_v50 = vsel %vm190_vm9, %v316_v49, -inf }
 0x41f   :  { %322 = vmax.xlane.f32.xlu0 %v321_v50 }
 0x42f   :  { %1375 = vrot.lane.b32.xlu2 %v1369_v16, %s1522_s29  ;;  %v433_v16 = vperm.slane %v1632_v55, 1 }
 0x487   :  { %v427_v15 = vpop.f32.mrf.mxu2 }
 0x48a   :  { %v320_v51 = vpop.xlane.xlu2 %319 }
 0x48b   :  { %v324_v52 = vsub.f32 %v313_v45, %v320_v51 }
 0x48d   :  { %v326_v54 = vmul.f32 1.442695, %v324_v52 }
 0x48f   :  { %1404 = vpow2.f32 %v326_v54  ;;  %v430_v22 = vpop.f32.mrf.mxu2 }
 0x492   :  { %v323_v56 = vpop.xlane.xlu0 %322  ;;  %v1376_v57 = vpop.permute.xlu2 %1375 }
 0x493   :  { %v325_v58 = vsub.f32 %v316_v49, %v323_v56  ;;  %v1377_v59 = vunpack.i.l.bf16 %v1376_v57  ;;  %v1378_v62 = vunpack.i.h.bf16 %v1376_v57  ;;  %v482_v57 = vperm.slane %v1632_v55, 2 }
 0x495   :  { %v1405_v60 = vpop.eup %1404  ;;  %v328_v61 = vmul.f32 1.442695, %v325_v58  ;;  %366 = vmatpush.msrb.mxu0 %v1377_v59 }
 0x496   :  { %v330_v63 = vsel %vm190_vm9, %v1405_v60, 0.0 }
 0x497   :  { %1406 = vpow2.f32 %v328_v61  ;;  %331 = vadd.xlane.f32.xlu1 %v330_v63  ;;  %367 = vmatpush.msrb.mxu0 %v1378_v62  ;;  %v485_v61 = vperm.slane %v1632_v55, 3 }
 0x49d   :  { %v1407_v0 = vpop.eup %1406 }
 0x49e   :  { %v333_v1 = vsel %vm190_vm9, %v1407_v0, 0.0 }
 0x49f   :  { %334 = vadd.xlane.f32.xlu2 %v333_v1 }
 0x50a   :  { %v332_v3 = vpop.xlane.xlu1 %331 }
 0x50b   :  { %1408 = vrcp.f32 %v332_v3 }
 0x511   :  { %v1409_v4 = vpop.eup %1408 }
 0x512   :  { %v335_v6 = vpop.xlane.xlu2 %334  ;;  %v338_v7 = vmul.f32 %v1409_v4, %v1405_v60 }
 0x513   :  { %1410 = vrcp.f32 %v335_v6 }
 0x514   :  { %1302 = vmatmul.msk.f32.vlgmr.msrb.gmra.mxu0 %vm190_vm9, %v338_v7 }
 0x519   :  { %v1411_v8 = vpop.eup %1410 }
 0x51a   :  { %v339_v9 = vmul.f32 %v1411_v8, %v1407_v0  ;;  %v547_v8 = vld [vmem:[%s1999_s7 + $0x38] sm:$0xff] }
 0x51b   :  { %564 = vmatpush.msra.mxu0 %v547_v8 }
 0x51c   :  { %1303 = vmatmul.msk.f32.gmra.mxu0 %vm190_vm9, %v339_v9  ;;  %v546_v9 = vld [vmem:[%s1999_s7 + $0x30] sm:$0xff] }
 0x51d   :  { %565 = vmatpush.msra.mxu0 %v546_v9 }
 0x51f   :  { %566 = vmatpush.msra.mxu0 %v545_v11 }
 0x591   :  { %v369_v13 = vpop.f32.mrf.mxu0 }
 0x592   :  { %1304 = vmatmul.msk.f32.vlgmr.msrb.gmra.mxu1 %vm190_vm9, %v369_v13  ;;  %v544_v13 = vld [vmem:[%s1999_s7 + $0x20] sm:$0xff] }
 0x593   :  { %567 = vmatpush.msra.mxu0 %v544_v13 }
 0x599   :  { %v372_v14 = vpop.f32.mrf.mxu0 }
 0x59a   :  { %1305 = vmatmul.msk.f32.gmra.mxu1 %vm190_vm9, %v372_v14  ;;  %v543_v14 = vld [vmem:[%s1999_s7 + $0x18] sm:$0xff] }
 0x59b   :  { %568 = vmatpush.msra.mxu0 %v543_v14 }
 0x60f   :  { %v398_v17 = vpop.f32.mrf.mxu1 }
 0x610   :  { %v428_v18 = vadd.f32 %v427_v15, %v398_v17  ;;  %v542_v15 = vld [vmem:[%s1999_s7 + $0x10] sm:$0xff]  ;;  %v540_v17 = vld [vmem:[%s1999_s7] sm:$0xff] }
 0x611   :  { %569 = vmatpush.msra.mxu0 %v542_v15 }
 0x612   :  { %v434_v19 = vadd.f32 %v433_v16, %v428_v18  ;;  %v492_v18 = vperm.slane %v1632_v55, 4 }
 0x614   :  { %v436_v20 = vadd.f32 %v434_v19, %v1621_v48 }
 0x616   :  { %v438_v21 = vsel %vm87_vm0, %v436_v20, 0.0 }
 0x617   :  { %439 = vadd.xlane.f32.xlu0 %v438_v21  ;;  %v401_v23 = vpop.f32.mrf.mxu1 }
 0x618   :  { %v431_v24 = vadd.f32 %v430_v22, %v401_v23 }
 0x61a   :  { %v435_v25 = vadd.f32 %v433_v16, %v431_v24  ;;  %v541_v16 = vld [vmem:[%s1999_s7 + $0x8] sm:$0xff] }
 0x61b   :  { %570 = vmatpush.msra.mxu0 %v541_v16 }
 0x61c   :  { %v437_v26 = vadd.f32 %v435_v25, %v1625_v53  ;;  %v491_v53 = vld [vmem:[%s1998_s6 + $0x18] sm:$0xff] }
 0x61d   :  { %511 = vmatpush.msra.mxu3 %v491_v53  ;;  %571 = vmatpush.msra.mxu0 %v540_v17 }
 0x61e   :  { %v441_v27 = vsel %vm87_vm0, %v437_v26, 0.0 }
 0x61f   :  { %442 = vadd.xlane.f32.xlu1 %v441_v27  ;;  %512 = vmatpush.msra.mxu3 %v490_v37 }
 0x621   :  { %513 = vmatpush.msra.mxu3 %v489_v38 }
 0x623   :  { %514 = vmatpush.msra.mxu3 %v488_v39  ;;  %v548_v39 = vperm.slane %v1632_v55, 5 }
 0x68a   :  { %v440_v28 = vpop.xlane.xlu0 %439 }
 0x68b   :  { %v444_v29 = vmul.f32 %v440_v28, %v1598_v10 }
 0x68d   :  { %v446_v30 = vsub.f32 %v436_v20, %v444_v29 }
 0x68f   :  { %v448_v31 = vmul.f32 %v446_v30, %v446_v30 }
 0x691   :  { %v450_v32 = vsel %vm87_vm0, %v448_v31, 0.0 }
 0x692   :  { %451 = vadd.xlane.f32.xlu0 %v450_v32  ;;  %v443_v48 = vpop.xlane.xlu1 %442 }
 0x693   :  { %v445_v33 = vmul.f32 %v443_v48, %v1598_v10 }
 0x695   :  { %v447_v34 = vsub.f32 %v437_v26, %v445_v33 }
 0x697   :  { %v449_v35 = vmul.f32 %v447_v34, %v447_v34 }
 0x699   :  { %v453_v36 = vsel %vm87_vm0, %v449_v35, 0.0 }
 0x69a   :  { %454 = vadd.xlane.f32.xlu1 %v453_v36 }
 0x705   :  { %v452_v40 = vpop.xlane.xlu0 %451 }
 0x706   :  { %v456_v41 = vmul.f32 %v452_v40, %v1598_v10 }
 0x708   :  { %v458_v42 = vadd.f32 1e-12, %v456_v41 }
 0x70a   :  { %1412 = vrsqrt.f32 %v458_v42  ;;  %vm466_vm11 = vweird.f32 %v458_v42 }
 0x70d   :  { %v455_v43 = vpop.xlane.xlu1 %454 }
 0x70e   :  { %v457_v44 = vmul.f32 %v455_v43, %v1598_v10 }
 0x710   :  { %v1413_v45 = vpop.eup %1412  ;;  %v459_v46 = vadd.f32 1e-12, %v457_v44 }
 0x711   :  { %v461_v47 = vmul.f32 %v1413_v45, %v458_v42  ;;  %vm467_vm10 = vweird.f32 %v1413_v45 }
 0x712   :  { %1414 = vrsqrt.f32 %v459_v46  ;;  %vm468_vm12 = vmor %vm466_vm11, %vm467_vm10  ;;  %vm476_vm14 = vweird.f32 %v459_v46 }
 0x713   :  { %v462_v49 = vmul.f32 %v1413_v45, %v461_v47 }
 0x715   :  { %v463_v50 = vmul.f32 0.5, %v462_v49 }
 0x717   :  { %v464_v51 = vsub.f32 1.5, %v463_v50 }
 0x718   :  { %v1415_v52 = vpop.eup %1414 }
 0x719   :  { %v465_v54 = vmul.f32 %v1413_v45, %v464_v51  ;;  %v471_v56 = vmul.f32 %v1415_v52, %v459_v46  ;;  %vm477_vm13 = vweird.f32 %v1415_v52 }
 0x71a   :  { %vm478_vm15 = vmor %vm476_vm14, %vm477_vm13 }
 0x71b   :  { %v469_v58 = vsel %vm468_vm12, %v1413_v45, %v465_v54  ;;  %v472_v59 = vmul.f32 %v1415_v52, %v471_v56 }
 0x71c   :  { %v480_v60 = vmul.f32 %v469_v58, %v446_v30 }
 0x71d   :  { %v473_v62 = vmul.f32 0.5, %v472_v59 }
 0x71e   :  { %v483_v63 = vmul.f32 %v482_v57, %v480_v60 }
 0x71f   :  { %v474_v0 = vsub.f32 1.5, %v473_v62  ;;  %v1319_v62 = vld [vmem:[%s1996_s4 + $0x30] sm:$0xff] }
 0x720   :  { %v486_v1 = vadd.f32 %v485_v61, %v483_v63  ;;  %v1318_v63 = vld [vmem:[%s1996_s4 + $0x28] sm:$0xff] }
 0x721   :  { %v475_v2 = vmul.f32 %v1415_v52, %v474_v0  ;;  %v1317_v0 = vld [vmem:[%s1996_s4 + $0x20] sm:$0xff] }
 0x722   :  { %1308 = vmatmul.msk.f32.vlgmr.msra.gmra.mxu3 %vm87_vm0, %v486_v1 }
 0x723   :  { %v479_v3 = vsel %vm478_vm15, %v1415_v52, %v475_v2 }
 0x724   :  { %v481_v4 = vmul.f32 %v479_v3, %v447_v34 }
 0x726   :  { %v484_v6 = vmul.f32 %v482_v57, %v481_v4 }
 0x728   :  { %v487_v7 = vadd.f32 %v485_v61, %v484_v6  ;;  %v1320_v61 = vld [vmem:[%s1996_s4 + $0x38] sm:$0xff] }
 0x729   :  { %662 = vmatpush.msra.mxu1 %v1320_v61 }
 0x72a   :  { %1309 = vmatmul.msk.f32.gmra.mxu3 %vm87_vm0, %v487_v7 }
 0x72b   :  { %663 = vmatpush.msra.mxu1 %v1319_v62 }
 0x72d   :  { %664 = vmatpush.msra.mxu1 %v1318_v63 }
 0x72f   :  { %665 = vmatpush.msra.mxu1 %v1317_v0 }
 0x7a5   :  { %v516_v19 = vpop.f32.mrf.mxu3 }
 0x7a6   :  { %v517_v20 = vadd.f32 %v516_v19, %v492_v18 }
 0x7a8   :  { %v522_v21 = vmul.f32 %v517_v20, %v517_v20 }
 0x7aa   :  { %v524_v22 = vmul.f32 %v522_v21, %v517_v20 }
 0x7ac   :  { %v526_v23 = vmul.f32 0.044715, %v524_v22  ;;  %v628_v22 = vperm.slane %v1632_v55, 7 }
 0x7ad   :  { %v519_v24 = vpop.f32.mrf.mxu3 }
 0x7ae   :  { %v528_v25 = vadd.f32 %v526_v23, %v517_v20  ;;  %v520_v26 = vadd.f32 %v519_v24, %v492_v18  ;;  %v625_v18 = vperm.slane %v1632_v55, 6  ;;  %v1791_v55 = vld [vmem:[%s1995_s3 + $0x8] sm:$0xff]  ;;  %s1259_s3 = sshll.u32 %s2003_s11, 4  ;;  %s1524_s11 = smov [#allocation4]   ;;  %s1260_s3 = int_to_ptr.hbm [resolvable:$true] %s1259_s3 }
 0x7b0   :  { %v530_v27 = vmul.f32 0.7978846, %v528_v25  ;;  %v523_v28 = vmul.f32 %v520_v26, %v520_v26 }
 0x7b2   :  { %1416 = vtanh.f32 %v530_v27  ;;  %v525_v29 = vmul.f32 %v523_v28, %v520_v26 }
 0x7b4   :  { %v527_v30 = vmul.f32 0.044715, %v525_v29 }
 0x7b6   :  { %v529_v31 = vadd.f32 %v527_v30, %v520_v26 }
 0x7b8   :  { %v1417_v32 = vpop.eup %1416  ;;  %v531_v48 = vmul.f32 0.7978846, %v529_v31 }
 0x7b9   :  { %v534_v33 = vadd.f32 1.0, %v1417_v32  ;;  %v643_v32 = vperm.slane %v1791_v55, 0 }
 0x7ba   :  { %1418 = vtanh.f32 %v531_v48 }
 0x7bb   :  { %v536_v34 = vmul.f32 0.5, %v534_v33 }
 0x7bd   :  { %v538_v35 = vmul.f32 %v536_v34, %v517_v20 }
 0x7bf   :  { %1310 = vmatmul.msk.f32.vlgmr.msra.gmra.mxu0 %vm549_vm1, %v538_v35 }
 0x7c0   :  { %v1419_v36 = vpop.eup %1418 }
 0x7c1   :  { %v535_v53 = vadd.f32 1.0, %v1419_v36 }
 0x7c3   :  { %v537_v37 = vmul.f32 0.5, %v535_v53 }
 0x7c5   :  { %v539_v38 = vmul.f32 %v537_v37, %v520_v26 }
 0x7c7   :  { %1311 = vmatmul.msk.f32.gmra.mxu0 %vm549_vm1, %v539_v38 }
 0x83c   :  { %v573_v40 = vpop.f32.mrf.mxu0 }
 0x83d   :  { %v574_v41 = vadd.f32 %v573_v40, %v548_v39 }
 0x83f   :  { %v579_v42 = vadd.f32 %v574_v41, %v486_v1 }
 0x841   :  { %v581_v43 = vsel %vm87_vm0, %v579_v42, 0.0 }
 0x842   :  { %582 = vadd.xlane.f32.xlu0 %v581_v43 }
 0x844   :  { %v576_v44 = vpop.f32.mrf.mxu0 }
 0x845   :  { %v577_v45 = vadd.f32 %v576_v44, %v548_v39 }
 0x847   :  { %v580_v46 = vadd.f32 %v577_v45, %v487_v7 }
 0x849   :  { %v584_v47 = vsel %vm87_vm0, %v580_v46, 0.0 }
 0x84a   :  { %585 = vadd.xlane.f32.xlu1 %v584_v47 }
 0x8b5   :  { %v583_v49 = vpop.xlane.xlu0 %582 }
 0x8b6   :  { %v587_v50 = vmul.f32 %v583_v49, %v1598_v10 }
 0x8b8   :  { %v589_v51 = vsub.f32 %v579_v42, %v587_v50 }
 0x8ba   :  { %v591_v52 = vmul.f32 %v589_v51, %v589_v51 }
 0x8bc   :  { %v593_v54 = vsel %vm87_vm0, %v591_v52, 0.0 }
 0x8bd   :  { %594 = vadd.xlane.f32.xlu0 %v593_v54  ;;  %v586_v56 = vpop.xlane.xlu1 %585 }
 0x8be   :  { %v588_v57 = vmul.f32 %v586_v56, %v1598_v10 }
 0x8c0   :  { %v590_v58 = vsub.f32 %v580_v46, %v588_v57 }
 0x8c2   :  { %v592_v59 = vmul.f32 %v590_v58, %v590_v58 }
 0x8c4   :  { %v596_v60 = vsel %vm87_vm0, %v592_v59, 0.0 }
 0x8c5   :  { %597 = vadd.xlane.f32.xlu2 %v596_v60 }
 0x930   :  { %v595_v1 = vpop.xlane.xlu0 %594 }
 0x931   :  { %v599_v2 = vmul.f32 %v595_v1, %v1598_v10 }
 0x933   :  { %v601_v3 = vadd.f32 1e-12, %v599_v2 }
 0x935   :  { %1420 = vrsqrt.f32 %v601_v3  ;;  %vm609_vm3 = vweird.f32 %v601_v3 }
 0x938   :  { %v598_v4 = vpop.xlane.xlu2 %597 }
 0x939   :  { %v600_v6 = vmul.f32 %v598_v4, %v1598_v10 }
 0x93b   :  { %v1421_v7 = vpop.eup %1420  ;;  %v602_v8 = vadd.f32 1e-12, %v600_v6 }
 0x93c   :  { %v604_v9 = vmul.f32 %v1421_v7, %v601_v3  ;;  %vm610_vm2 = vweird.f32 %v1421_v7 }
 0x93d   :  { %1422 = vrsqrt.f32 %v602_v8  ;;  %vm611_vm4 = vmor %vm609_vm3, %vm610_vm2  ;;  %vm619_vm6 = vweird.f32 %v602_v8 }
 0x93e   :  { %v605_v11 = vmul.f32 %v1421_v7, %v604_v9 }
 0x940   :  { %v606_v13 = vmul.f32 0.5, %v605_v11 }
 0x942   :  { %v607_v14 = vsub.f32 1.5, %v606_v13 }
 0x943   :  { %v1423_v15 = vpop.eup %1422 }
 0x944   :  { %v608_v16 = vmul.f32 %v1421_v7, %v607_v14  ;;  %v614_v17 = vmul.f32 %v1423_v15, %v602_v8  ;;  %vm620_vm5 = vweird.f32 %v1423_v15 }
 0x945   :  { %vm621_vm7 = vmor %vm619_vm6, %vm620_vm5 }
 0x946   :  { %v612_v19 = vsel %vm611_vm4, %v1421_v7, %v608_v16  ;;  %v615_v20 = vmul.f32 %v1423_v15, %v614_v17 }
 0x947   :  { %v623_v21 = vmul.f32 %v612_v19, %v589_v51 }
 0x948   :  { %v616_v23 = vmul.f32 0.5, %v615_v20 }
 0x949   :  { %v626_v24 = vmul.f32 %v625_v18, %v623_v21 }
 0x94a   :  { %v617_v25 = vsub.f32 1.5, %v616_v23  ;;  %v1313_v23 = vld [vmem:[%s1997_s5 + $0x20] sm:$0xff] }
 0x94b   :  { %v1780_v26 = vadd.f32 %v628_v22, %v626_v24  ;;  %v1315_v24 = vld [vmem:[%s1997_s5 + $0x30] sm:$0xff] }
 0x94c   :  { %v618_v27 = vmul.f32 %v1423_v15, %v617_v25 }
 0x94d   :  { %1321 = vmatmul.msk.f32.vlgmr.msra.gmra.mxu1 %vm87_vm0, %v1780_v26 }
 0x94e   :  { %v622_v28 = vsel %vm621_vm7, %v1423_v15, %v618_v27 }
 0x94f   :  { %v624_v29 = vmul.f32 %v622_v28, %v590_v58 }
 0x951   :  { %v627_v30 = vmul.f32 %v625_v18, %v624_v29 }
 0x953   :  { %v1784_v31 = vadd.f32 %v628_v22, %v627_v30  ;;  %v1314_v22 = vld [vmem:[%s1997_s5 + $0x28] sm:$0xff] }
 0x955   :  { %1322 = vmatmul.msk.f32.gmra.mxu1 %vm87_vm0, %v1784_v31 }
 0x9ca   :  { %v667_v48 = vpop.f32.mrf.mxu1 }
 0x9cb   :  { %v668_v33 = vadd.f32 %v667_v48, %v643_v32 }
 0x9cd   :  { %675 = vrot.lane.b32.xlu0 %v668_v33, %s1518_s18 }
 0x9d2   :  { %v670_v34 = vpop.f32.mrf.mxu1 }
 0x9d3   :  { %v671_v35 = vadd.f32 %v670_v34, %v643_v32  ;;  %v921_v34 = vperm.slane %v1791_v55, 1 }
 0x9d5   :  { %771 = vrot.lane.b32.xlu0 %v668_v33, %s1520_s2  ;;  %773 = vrot.lane.b32.xlu2 %v671_v35, %s1520_s2  ;;  %v1379_v46 = vpack.i.bf16 %v668_v33, %v671_v35  ;;  %s1268_s2 = sshll.u32 %s1524_s11, 4  ;;  %s1269_s2 = int_to_ptr.vmem [resolvable:$true] %s1268_s2 }
 0x9d6   :  { %677 = vrot.lane.b32.xlu1 %v671_v35, %s1518_s18  ;;  %s1523_s18 = smov [#allocation2]  }
 0x9de   :  { %767 = vrot.lane.b32.xlu1 %v668_v33, %s1521_s0 }
 0xa2f   :  { %v774_v36 = vpop.permute.xlu2 %773 }
 0xa30   :  { %1329 = vmatpush.xpose.msk.msrb.mxu0 %vm190_vm9, %v774_v36 }
 0xa3f   :  { %v676_v53 = vpop.permute.xlu0 %675 }
 0xa47   :  { %v772_v37 = vpop.permute.xlu0 %771 }
 0xa48   :  { %v678_v38 = vpop.permute.xlu1 %677  ;;  %1330 = vmatpush.xpose.msk.msrb.mxu0 %vm190_vm9, %v772_v37 }
 0xa49   :  { %1323 = vmatpush.xpose.msk.msra.mxu2 %vm190_vm9, %v678_v38 }
 0xa4d   :  { %1324 = vmatpush.xpose.msk.msra.mxu2 %vm190_vm9, %v676_v53 }
 0xa50   :  { %1325 = vmatmul.msk.f32.vlgmr.msra.gmra.mxu2 %vm190_vm9, %v668_v33  ;;  %v768_v39 = vpop.permute.xlu1 %767 }
 0xa51   :  { %1331 = vmatmul.msk.f32.vlgmr.msrb.gmra.mxu0 %vm190_vm9, %v768_v39 }
 0xa58   :  { %1326 = vmatmul.msk.f32.gmra.mxu2 %vm190_vm9, %v671_v35 }
 0xace   :  { %v800_v40 = vpop.f32.mrf.mxu0 }
 0xacf   :  { %v801_v41 = vadd.f32 %v800_v40, %v1654_v5 }
 0xad1   :  { %v806_v42 = vsel %vm190_vm9, %v801_v41, -inf }
 0xad2   :  { %807 = vmax.xlane.f32.xlu2 %v806_v42 }
 0xad3   :  { %v704_v43 = vpop.f32.mrf.mxu2 }
 0xad4   :  { %v705_v44 = vadd.f32 %v704_v43, %v1654_v5 }
 0xad6   :  { %v710_v45 = vsel %vm190_vm9, %v705_v44, -inf }
 0xad7   :  { %711 = vmax.xlane.f32.xlu0 %v710_v45 }
 0xadb   :  { %v707_v5 = vpop.f32.mrf.mxu2 }
 0xadc   :  { %v708_v59 = vadd.f32 %v707_v5, %v1658_v12 }
 0xade   :  { %v713_v61 = vsel %vm190_vm9, %v708_v59, -inf }
 0xaeb   :  { %1380 = vrot.lane.b32.xlu0 %v1379_v46, %s1519_s1  ;;  %s1257_s1 = sshll.u32 %s1523_s18, 4  ;;  %s1258_s1 = int_to_ptr.vmem [resolvable:$true] %s1257_s1 }
 0xaf3   :  { %769 = vrot.lane.b32.xlu0 %v671_v35, %s1521_s0 }
 0xb45   :  { %v808_v47 = vpop.xlane.xlu2 %807 }
 0xb46   :  { %v812_v49 = vsub.f32 %v801_v41, %v808_v47 }
 0xb48   :  { %v814_v50 = vmul.f32 1.442695, %v812_v49 }
 0xb4a   :  { %1424 = vpow2.f32 %v814_v50  ;;  %v712_v51 = vpop.xlane.xlu0 %711 }
 0xb4b   :  { %v716_v52 = vsub.f32 %v705_v44, %v712_v51  ;;  %v1342_v51 = vld [vmem:[%s1998_s6 + $0x38] sm:$0xff] }
 0xb4c   :  { %1000 = vmatpush.msra.mxu0 %v1342_v51 }
 0xb4d   :  { %v718_v54 = vmul.f32 1.442695, %v716_v52  ;;  %v1341_v52 = vld [vmem:[%s1998_s6 + $0x30] sm:$0xff] }
 0xb4e   :  { %1001 = vmatpush.msra.mxu0 %v1341_v52 }
 0xb4f   :  { %1426 = vpow2.f32 %v718_v54  ;;  %v1340_v54 = vld [vmem:[%s1998_s6 + $0x28] sm:$0xff] }
 0xb50   :  { %v1425_v56 = vpop.eup %1424  ;;  %1002 = vmatpush.msra.mxu0 %v1340_v54 }
 0xb51   :  { %v818_v57 = vsel %vm190_vm9, %v1425_v56, 0.0 }
 0xb52   :  { %819 = vadd.xlane.f32.xlu2 %v818_v57 }
 0xb55   :  { %v1427_v58 = vpop.eup %1426 }
 0xb56   :  { %v722_v60 = vsel %vm190_vm9, %v1427_v58, 0.0 }
 0xb57   :  { %723 = vadd.xlane.f32.xlu1 %v722_v60 }
 0xb5a   :  { %714 = vmax.xlane.f32.xlu2 %v713_v61 }
 0xb5d   :  { %v1381_v62 = vpop.permute.xlu0 %1380 }
 0xb5e   :  { %v1382_v63 = vunpack.i.l.bf16 %v1381_v62  ;;  %v1383_v0 = vunpack.i.h.bf16 %v1381_v62 }
 0xb60   :  { %758 = vmatpush.msrb.mxu3 %v1382_v63 }
 0xb62   :  { %759 = vmatpush.msrb.mxu3 %v1383_v0 }
 0xb64   :  { %912 = vmatpush.msra.mxu3 %v1314_v22 }
 0xb65   :  { %v770_v1 = vpop.permute.xlu0 %769 }
 0xb66   :  { %1332 = vmatmul.msk.f32.gmra.mxu0 %vm190_vm9, %v770_v1  ;;  %913 = vmatpush.msra.mxu3 %v1313_v23 }
 0xb70   :  { %1385 = vrot.lane.b32.xlu1 %v1379_v46, %s1522_s29 }
 0xbc5   :  { %v820_v2 = vpop.xlane.xlu2 %819 }
 0xbca   :  { %v724_v3 = vpop.xlane.xlu1 %723 }
 0xbcb   :  { %1428 = vrcp.f32 %v724_v3 }
 0xbcd   :  { %v715_v4 = vpop.xlane.xlu2 %714 }
 0xbce   :  { %v717_v6 = vsub.f32 %v708_v59, %v715_v4 }
 0xbd0   :  { %v720_v7 = vmul.f32 1.442695, %v717_v6  ;;  %v973_v6 = vperm.slane %v1791_v55, 3 }
 0xbd1   :  { %v1429_v8 = vpop.eup %1428 }
 0xbd2   :  { %v730_v9 = vmul.f32 %v1429_v8, %v1427_v58  ;;  %1430 = vpow2.f32 %v720_v7 }
 0xbd3   :  { %1432 = vrcp.f32 %v820_v2  ;;  %v970_v2 = vperm.slane %v1791_v55, 2 }
 0xbd4   :  { %1327 = vmatmul.msk.f32.vlgmr.msrb.gmra.mxu3 %vm190_vm9, %v730_v9  ;;  %v1352_v9 = vld [vmem:[%s1999_s7 + $0x78] sm:$0xff] }
 0xbd8   :  { %v1431_v11 = vpop.eup %1430 }
 0xbd9   :  { %v725_v13 = vsel %vm190_vm9, %v1431_v11, 0.0  ;;  %v1433_v15 = vpop.eup %1432 }
 0xbda   :  { %726 = vadd.xlane.f32.xlu2 %v725_v13  ;;  %v826_v20 = vmul.f32 %v1433_v15, %v1425_v56  ;;  %v1339_v56 = vld [vmem:[%s1998_s6 + $0x20] sm:$0xff]  ;;  %v1350_v13 = vld [vmem:[%s1999_s7 + $0x68] sm:$0xff]  ;;  %v1348_v15 = vld [vmem:[%s1999_s7 + $0x58] sm:$0xff] }
 0xbdb   :  { %1003 = vmatpush.msra.mxu0 %v1339_v56 }
 0xbe2   :  { %v1386_v14 = vpop.permute.xlu1 %1385 }
 0xbe3   :  { %v1387_v16 = vunpack.i.l.bf16 %v1386_v14  ;;  %v803_v17 = vpop.f32.mrf.mxu0  ;;  %v1388_v19 = vunpack.i.h.bf16 %v1386_v14  ;;  %v1349_v14 = vld [vmem:[%s1999_s7 + $0x60] sm:$0xff] }
 0xbe4   :  { %v804_v18 = vadd.f32 %v803_v17, %v1658_v12  ;;  %v1316_v12 = vld [vmem:[%s1997_s5 + $0x38] sm:$0xff]  ;;  %v1346_v17 = vld [vmem:[%s1999_s7 + $0x48] sm:$0xff] }
 0xbe5   :  { %854 = vmatpush.msrb.mxu1 %v1387_v16  ;;  %883 = vmatpush.msrb.mxu2 %v1316_v12  ;;  %v1347_v16 = vld [vmem:[%s1999_s7 + $0x50] sm:$0xff] }
 0xbe6   :  { %v809_v21 = vsel %vm190_vm9, %v804_v18, -inf }
 0xbe7   :  { %810 = vmax.xlane.f32.xlu0 %v809_v21  ;;  %855 = vmatpush.msrb.mxu1 %v1388_v19  ;;  %v981_v19 = vperm.slane %v1791_v55, 4 }
 0xbe8   :  { %1333 = vmatmul.msk.f32.vlgmr.msrb.gmra.mxu1 %vm190_vm9, %v826_v20  ;;  %884 = vmatpush.msrb.mxu2 %v1315_v24 }
 0xbe9   :  { %1053 = vmatpush.msra.mxu1 %v1352_v9  ;;  %v1359_v9 = vld [vmem:[%s2001_s9 + $0x38] sm:$0xff] }
 0xc4d   :  { %v727_v25 = vpop.xlane.xlu2 %726 }
 0xc4e   :  { %1434 = vrcp.f32 %v727_v25 }
 0xc54   :  { %v1435_v27 = vpop.eup %1434 }
 0xc55   :  { %v731_v28 = vmul.f32 %v1435_v27, %v1431_v11  ;;  %v1351_v11 = vld [vmem:[%s1999_s7 + $0x70] sm:$0xff] }
 0xc56   :  { %1054 = vmatpush.msra.mxu1 %v1351_v11 }
 0xc57   :  { %1328 = vmatmul.msk.f32.gmra.mxu3 %vm190_vm9, %v731_v28  ;;  %v761_v29 = vpop.f32.mrf.mxu3 }
 0xc58   :  { %1055 = vmatpush.msra.mxu1 %v1350_v13  ;;  %v1358_v13 = vld [vmem:[%s2001_s9 + $0x30] sm:$0xff] }
 0xc5a   :  { %v811_v48 = vpop.xlane.xlu0 %810  ;;  %1056 = vmatpush.msra.mxu1 %v1349_v14 }
 0xc5b   :  { %v813_v33 = vsub.f32 %v804_v18, %v811_v48  ;;  %v1345_v18 = vld [vmem:[%s1999_s7 + $0x40] sm:$0xff] }
 0xc5c   :  { %1057 = vmatpush.msra.mxu1 %v1348_v15  ;;  %v1357_v15 = vld [vmem:[%s2001_s9 + $0x28] sm:$0xff] }
 0xc5d   :  { %v816_v37 = vmul.f32 1.442695, %v813_v33 }
 0xc5e   :  { %1058 = vmatpush.msra.mxu1 %v1347_v16 }
 0xc5f   :  { %1337 = vmatmul.msk.f32.vlgmr.msra.gmra.mxu3 %vm190_vm9, %v761_v29  ;;  %1436 = vpow2.f32 %v816_v37 }
 0xc60   :  { %1059 = vmatpush.msra.mxu1 %v1346_v17  ;;  %v1356_v17 = vld [vmem:[%s2001_s9 + $0x20] sm:$0xff] }
 0xc62   :  { %1060 = vmatpush.msra.mxu1 %v1345_v18 }
 0xc65   :  { %v857_v30 = vpop.f32.mrf.mxu1  ;;  %v1437_v41 = vpop.eup %1436 }
 0xc66   :  { %1335 = vmatmul.msk.f32.vlgmr.msrb.gmra.mxu2 %vm190_vm9, %v857_v30  ;;  %v821_v42 = vsel %vm190_vm9, %v1437_v41, 0.0 }
 0xcda   :  { %v764_v32 = vpop.f32.mrf.mxu3 }
 0xcdb   :  { %1338 = vmatmul.msk.f32.gmra.mxu3 %vm190_vm9, %v764_v32  ;;  %v1038_v32 = vperm.slane %v1791_v55, 5 }
 0xce2   :  { %v915_v35 = vpop.f32.mrf.mxu3 }
 0xce9   :  { %v886_v36 = vpop.f32.mrf.mxu2 }
 0xcea   :  { %v916_v53 = vadd.f32 %v915_v35, %v886_v36 }
 0xcec   :  { %v922_v38 = vadd.f32 %v921_v34, %v916_v53 }
 0xcee   :  { %v924_v39 = vadd.f32 %v922_v38, %v1780_v26 }
 0xcf0   :  { %v926_v40 = vsel %vm87_vm0, %v924_v39, 0.0 }
 0xcf1   :  { %927 = vadd.xlane.f32.xlu2 %v926_v40 }
 0xcf9   :  { %822 = vadd.xlane.f32.xlu2 %v821_v42 }
 0xd64   :  { %v928_v43 = vpop.xlane.xlu2 %927 }
 0xd65   :  { %v932_v44 = vmul.f32 %v928_v43, %v1598_v10 }
 0xd67   :  { %v934_v45 = vsub.f32 %v924_v39, %v932_v44  ;;  %v918_v39 = vpop.f32.mrf.mxu3 }
 0xd69   :  { %v936_v46 = vmul.f32 %v934_v45, %v934_v45 }
 0xd6b   :  { %v938_v47 = vsel %vm87_vm0, %v936_v46, 0.0 }
 0xd6c   :  { %939 = vadd.xlane.f32.xlu1 %v938_v47  ;;  %v823_v49 = vpop.xlane.xlu2 %822  ;;  %v1097_v47 = vld [vmem:[%s2001_s9 + $0x18] sm:$0xff] }
 0xd6d   :  { %1438 = vrcp.f32 %v823_v49  ;;  %1114 = vmatpush.msra.mxu2 %v1097_v47  ;;  %v1096_v49 = vld [vmem:[%s2001_s9 + $0x10] sm:$0xff] }
 0xd6f   :  { %1115 = vmatpush.msra.mxu2 %v1096_v49 }
 0xd73   :  { %v1439_v50 = vpop.eup %1438 }
 0xd74   :  { %v827_v26 = vmul.f32 %v1439_v50, %v1437_v41 }
 0xd76   :  { %1334 = vmatmul.msk.f32.gmra.mxu1 %vm190_vm9, %v827_v26 }
 0xddf   :  { %v940_v57 = vpop.xlane.xlu1 %939 }
 0xde0   :  { %v944_v5 = vmul.f32 %v940_v57, %v1598_v10 }
 0xde2   :  { %v946_v58 = vadd.f32 1e-12, %v944_v5 }
 0xde4   :  { %1440 = vrsqrt.f32 %v946_v58  ;;  %vm954_vm10 = vweird.f32 %v946_v58 }
 0xdea   :  { %v1441_v59 = vpop.eup %1440 }
 0xdeb   :  { %v949_v60 = vmul.f32 %v1441_v59, %v946_v58  ;;  %vm955_vm8 = vweird.f32 %v1441_v59 }
 0xdec   :  { %vm956_vm11 = vmor %vm954_vm10, %vm955_vm8  ;;  %vm1160_vm8 = vcmask 1041408  }
 0xded   :  { %v950_v61 = vmul.f32 %v1441_v59, %v949_v60 }
 0xdef   :  { %v951_v62 = vmul.f32 0.5, %v950_v61 }
 0xdf1   :  { %v952_v63 = vsub.f32 1.5, %v951_v62 }
 0xdf3   :  { %v953_v0 = vmul.f32 %v1441_v59, %v952_v63  ;;  %v860_v1 = vpop.f32.mrf.mxu1 }
 0xdf4   :  { %1336 = vmatmul.msk.f32.gmra.mxu2 %vm190_vm9, %v860_v1 }
 0xdf5   :  { %v957_v3 = vsel %vm956_vm11, %v1441_v59, %v953_v0  ;;  %v1090_v0 = vperm.slane %v1791_v55, 6 }
 0xdf6   :  { %v968_v4 = vmul.f32 %v957_v3, %v934_v45 }
 0xdf8   :  { %v971_v7 = vmul.f32 %v970_v2, %v968_v4  ;;  %v1092_v4 = vperm.slane %v1791_v55, 7 }
 0xdfa   :  { %v974_v8 = vadd.f32 %v973_v6, %v971_v7 }
 0xdfc   :  { %1343 = vmatmul.msk.f32.vlgmr.msra.gmra.mxu0 %vm87_vm0, %v974_v8 }
 0xe77   :  { %v889_v53 = vpop.f32.mrf.mxu2 }
 0xe78   :  { %v919_v40 = vadd.f32 %v918_v39, %v889_v53  ;;  %v1154_v53 = vlaneseq }
 0xe79   :  { %v1005_v20 = vpop.f32.mrf.mxu0 }
 0xe7a   :  { %v1006_v21 = vadd.f32 %v1005_v20, %v981_v19  ;;  %v923_v43 = vadd.f32 %v921_v34, %v919_v40  ;;  %v1095_v34 = vld [vmem:[%s2001_s9 + $0x8] sm:$0xff]  ;;  %v1155_v39 = vand.u32 127, %v1154_v53 }
 0xe7b   :  { %1116 = vmatpush.msra.mxu2 %v1095_v34 }
 0xe7c   :  { %v1011_v22 = vmul.f32 %v1006_v21, %v1006_v21  ;;  %v925_v45 = vadd.f32 %v923_v43, %v1784_v31  ;;  %v1094_v31 = vld [vmem:[%s2001_s9] sm:$0xff]  ;;  %vm1188_vm3 = vcmp.ge.s32.totalorder %v1155_v39, 3  ;;  %vm1189_vm4 = vcmp.lt.s32.totalorder %v1155_v39, 10 }
 0xe7d   :  { %1117 = vmatpush.msra.mxu2 %v1094_v31  ;;  %vm1219_vm5 = vcmp.ge.s32.totalorder %v1155_v39, 10  ;;  %vm1220_vm6 = vcmp.lt.s32.totalorder %v1155_v39, 15  ;;  %vm1947_vm7 = vmand %vm1188_vm3, %vm1189_vm4 }
 0xe7e   :  { %v1013_v23 = vmul.f32 %v1011_v22, %v1006_v21  ;;  %v929_v46 = vsel %vm87_vm0, %v925_v45, 0.0  ;;  %vm1951_vm10 = vmand %vm1219_vm5, %vm1220_vm6 }
 0xe7f   :  { %1144 = vmatpush.msrb.mxu2 %v1359_v9 }
 0xe80   :  { %v1015_v12 = vmul.f32 0.044715, %v1013_v23 }
 0xe81   :  { %1145 = vmatpush.msrb.mxu2 %v1358_v13 }
 0xe82   :  { %v1017_v24 = vadd.f32 %v1015_v12, %v1006_v21 }
 0xe83   :  { %1146 = vmatpush.msrb.mxu2 %v1357_v15 }
 0xe84   :  { %v1019_v25 = vmul.f32 0.7978846, %v1017_v24 }
 0xe85   :  { %1147 = vmatpush.msrb.mxu2 %v1356_v17 }
 0xe86   :  { %1442 = vtanh.f32 %v1019_v25 }
 0xe8c   :  { %v1443_v27 = vpop.eup %1442 }
 0xe8d   :  { %v1023_v28 = vadd.f32 1.0, %v1443_v27  ;;  %v1464_v27 = vld [vmem:[%s2000_s8] sm:$0xf] }
 0xe8f   :  { %v1025_v29 = vmul.f32 0.5, %v1023_v28  ;;  %v1098_v28 = vperm.slane %v1464_v27, 2 }
 0xe91   :  { %v1027_v30 = vmul.f32 %v1025_v29, %v1006_v21 }
 0xe93   :  { %1353 = vmatmul.msk.f32.vlgmr.msra.gmra.mxu1 %vm549_vm1, %v1027_v30 }
 0xf10   :  { %v1062_v48 = vpop.f32.mrf.mxu1 }
 0xf11   :  { %v1063_v33 = vadd.f32 %v1062_v48, %v1038_v32 }
 0xf13   :  { %v1067_v35 = vadd.f32 %v1063_v33, %v974_v8 }
 0xf15   :  { %v1068_v36 = vsel %vm87_vm0, %v1067_v35, 0.0 }
 0xf16   :  { %1069 = vadd.xlane.f32.xlu2 %v1068_v36 }
 0xf89   :  { %v1070_v37 = vpop.xlane.xlu2 %1069 }
 0xf8a   :  { %v1071_v38 = vmul.f32 %v1070_v37, %v1598_v10 }
 0xf8c   :  { %v1072_v41 = vsub.f32 %v1067_v35, %v1071_v38 }
 0xf8e   :  { %v1073_v42 = vmul.f32 %v1072_v41, %v1072_v41 }
 0xf90   :  { %v1074_v44 = vsel %vm87_vm0, %v1073_v42, 0.0 }
 0xf91   :  { %1075 = vadd.xlane.f32.xlu2 %v1074_v44 }
 0xf99   :  { %930 = vadd.xlane.f32.xlu2 %v929_v46 }
0x1004   :  { %v1076_v50 = vpop.xlane.xlu2 %1075 }
0x1005   :  { %v1077_v26 = vmul.f32 %v1076_v50, %v1598_v10 }
0x1007   :  { %v1078_v51 = vadd.f32 1e-12, %v1077_v26 }
0x1009   :  { %1444 = vrsqrt.f32 %v1078_v51  ;;  %vm1085_vm12 = vweird.f32 %v1078_v51 }
0x100c   :  { %v931_v52 = vpop.xlane.xlu2 %930 }
0x100d   :  { %v933_v54 = vmul.f32 %v931_v52, %v1598_v10 }
0x100f   :  { %v1445_v56 = vpop.eup %1444  ;;  %v935_v57 = vsub.f32 %v925_v45, %v933_v54 }
0x1010   :  { %v1080_v5 = vmul.f32 %v1445_v56, %v1078_v51  ;;  %vm1086_vm9 = vweird.f32 %v1445_v56 }
0x1011   :  { %v937_v58 = vmul.f32 %v935_v57, %v935_v57  ;;  %vm1087_vm13 = vmor %vm1085_vm12, %vm1086_vm9 }
0x1012   :  { %v1081_v59 = vmul.f32 %v1445_v56, %v1080_v5 }
0x1013   :  { %v941_v60 = vsel %vm87_vm0, %v937_v58, 0.0 }
0x1014   :  { %v1082_v61 = vmul.f32 0.5, %v1081_v59  ;;  %942 = vadd.xlane.f32.xlu2 %v941_v60 }
0x1016   :  { %v1083_v62 = vsub.f32 1.5, %v1082_v61 }
0x1018   :  { %v1084_v63 = vmul.f32 %v1445_v56, %v1083_v62  ;;  %v1153_v62 = vld [vmem:[%s2002_s10] sm:$0x3] }
0x101a   :  { %v1088_v1 = vsel %vm1087_vm13, %v1445_v56, %v1084_v63 }
0x101b   :  { %v1089_v3 = vmul.f32 %v1088_v1, %v1072_v41 }
0x101d   :  { %v1091_v7 = vmul.f32 %v1090_v0, %v1089_v3 }
0x101f   :  { %v1093_v8 = vadd.f32 %v1092_v4, %v1091_v7 }
0x1021   :  { %1355 = vmatmul.msk.f32.vlgmr.msra.gmra.mxu2 %vm87_vm0, %v1093_v8 }
0x1087   :  { %v943_v11 = vpop.xlane.xlu2 %942 }
0x1088   :  { %v945_v14 = vmul.f32 %v943_v11, %v1598_v10 }
0x108a   :  { %v947_v16 = vadd.f32 1e-12, %v945_v14 }
0x108c   :  { %1446 = vrsqrt.f32 %v947_v16  ;;  %vm964_vm15 = vweird.f32 %v947_v16 }
0x1092   :  { %v1447_v18 = vpop.eup %1446 }
0x1093   :  { %v959_v20 = vmul.f32 %v1447_v18, %v947_v16  ;;  %vm965_vm14 = vweird.f32 %v1447_v18 }
0x1094   :  { %vm966_vm2 = vmor %vm964_vm15, %vm965_vm14 }
0x1095   :  { %v960_v21 = vmul.f32 %v1447_v18, %v959_v20 }
0x1097   :  { %v961_v22 = vmul.f32 0.5, %v960_v21 }
0x1099   :  { %v962_v23 = vsub.f32 1.5, %v961_v22 }
0x109b   :  { %v963_v10 = vmul.f32 %v1447_v18, %v962_v23 }
0x109d   :  { %v967_v12 = vsel %vm966_vm2, %v1447_v18, %v963_v10 }
0x109e   :  { %v969_v24 = vmul.f32 %v967_v12, %v935_v57 }
0x10a0   :  { %v972_v25 = vmul.f32 %v970_v2, %v969_v24 }
0x10a2   :  { %v975_v29 = vadd.f32 %v973_v6, %v972_v25  ;;  %v1128_v6 = vperm.slane %v1464_v27, 3 }
0x10a4   :  { %1344 = vmatmul.msk.f32.gmra.mxu0 %vm87_vm0, %v975_v29  ;;  %v1119_v30 = vpop.f32.mrf.mxu2 }
0x10a5   :  { %v1120_v32 = vadd.f32 %v1119_v30, %v1098_v28 }
0x10a7   :  { %1448 = vtanh.f32 %v1120_v32 }
0x10ad   :  { %v1449_v48 = vpop.eup %1448 }
0x10ae   :  { %1360 = vmatmul.msk.f32.vlgmr.msrb.gmra.mxu2 %vm87_vm0, %v1449_v48  ;;  %vm1157_vm0 = vcmp.lt.s32.totalorder %v1155_v39, 3 }
0x1121   :  { %v1008_v33 = vpop.f32.mrf.mxu0 }
0x1122   :  { %v1009_v2 = vadd.f32 %v1008_v33, %v981_v19 }
0x1124   :  { %v1012_v35 = vmul.f32 %v1009_v2, %v1009_v2 }
0x1126   :  { %v1014_v36 = vmul.f32 %v1012_v35, %v1009_v2 }
0x1128   :  { %v1016_v37 = vmul.f32 0.044715, %v1014_v36 }
0x112a   :  { %v1018_v38 = vadd.f32 %v1016_v37, %v1009_v2 }
0x112c   :  { %v1020_v40 = vmul.f32 0.7978846, %v1018_v38 }
0x112e   :  { %1450 = vtanh.f32 %v1020_v40 }
0x1131   :  { %v1149_v41 = vpop.f32.mrf.mxu2 }
0x1132   :  { %v1150_v55 = vadd.f32 %v1149_v41, %v1128_v6 }
0x1134   :  { %v1451_v43 = vpop.eup %1450  ;;  %1152 = vst [vmem:[#allocation2] sm:$0x3] %v1150_v55  ;;  %v1191_v44 = vsel %vm1947_vm7, %v1150_v55, -1e+30  ;;  %v1159_v45 = vsel %vm1157_vm0, %v1150_v55, -1e+30  ;;  %v1174_v9 = vmul.f32 %v1153_v62, %v1150_v55 }
0x1135   :  { %v1192_v46 = vsel %vm1160_vm8, %v1191_v44, -inf  ;;  %v1161_v47 = vsel %vm1160_vm8, %v1159_v45, -inf  ;;  %v1222_v49 = vsel %vm1951_vm10, %v1150_v55, -1e+30  ;;  %v1024_v34 = vadd.f32 1.0, %v1451_v43 }
0x1136   :  { %1193 = vmax.xlane.f32.xlu0 %v1192_v46  ;;  %1162 = vmax.xlane.f32.xlu1 %v1161_v47  ;;  %v1223_v31 = vsel %vm1160_vm8, %v1222_v49, -inf  ;;  %v1205_v14 = vsel %vm1947_vm7, %v1174_v9, 0.0  ;;  %v1175_v15 = vsel %vm1157_vm0, %v1174_v9, 0.0  ;;  %v1236_v16 = vsel %vm1951_vm10, %v1174_v9, 0.0  ;;  %1262 = dma.vmem_to_hbm [thread:$0]  %s1258_s1, 32, %s1260_s3, [#allocation3]  }
0x1137   :  { %1224 = vmax.xlane.f32.xlu2 %v1223_v31  ;;  %v1026_v50 = vmul.f32 0.5, %v1024_v34  ;;  %v1206_v17 = vsel %vm1160_vm8, %v1205_v14, 0.0  ;;  %v1176_v18 = vsel %vm1160_vm8, %v1175_v15, 0.0  ;;  %v1237_v20 = vsel %vm1160_vm8, %v1236_v16, 0.0 }
0x1139   :  { %v1028_v26 = vmul.f32 %v1026_v50, %v1009_v2 }
0x113b   :  { %1354 = vmatmul.msk.f32.gmra.mxu1 %vm549_vm1, %v1028_v26  ;;  %vm1250_vm1 = vcmask 0  }
0x11a9   :  { %v1194_v51 = vpop.xlane.xlu0 %1193  ;;  %v1163_v52 = vpop.xlane.xlu1 %1162 }
0x11aa   :  { %v1195_v54 = vsub.f32 %v1191_v44, %v1194_v51  ;;  %v1164_v56 = vsub.f32 %v1159_v45, %v1163_v52  ;;  %v1225_v57 = vpop.xlane.xlu2 %1224 }
0x11ab   :  { %v1226_v5 = vsub.f32 %v1222_v49, %v1225_v57 }
0x11ac   :  { %v1196_v58 = vmul.f32 1.442695, %v1195_v54  ;;  %v1165_v59 = vmul.f32 1.442695, %v1164_v56 }
0x11ad   :  { %v1227_v60 = vmul.f32 1.442695, %v1226_v5 }
0x11ae   :  { %1452 = vpow2.f32 %v1196_v58 }
0x11af   :  { %1454 = vpow2.f32 %v1165_v59 }
0x11b0   :  { %1456 = vpow2.f32 %v1227_v60 }
0x11b4   :  { %v1453_v61 = vpop.eup %1452 }
0x11b5   :  { %v1455_v63 = vpop.eup %1454  ;;  %v1198_v0 = vsel %vm1947_vm7, %v1453_v61, 0.0 }
0x11b6   :  { %v1457_v1 = vpop.eup %1456  ;;  %v1199_v3 = vsel %vm1160_vm8, %v1198_v0, 0.0  ;;  %v1167_v4 = vsel %vm1157_vm0, %v1455_v63, 0.0 }
0x11b7   :  { %1200 = vadd.xlane.f32.xlu0 %v1199_v3  ;;  %v1168_v7 = vsel %vm1160_vm8, %v1167_v4, 0.0  ;;  %v1229_v8 = vsel %vm1951_vm10, %v1457_v1, 0.0 }
0x11b8   :  { %1169 = vadd.xlane.f32.xlu1 %v1168_v7  ;;  %v1230_v11 = vsel %vm1160_vm8, %v1229_v8, 0.0  ;;  %v1065_v13 = vpop.f32.mrf.mxu1 }
0x11b9   :  { %1231 = vadd.xlane.f32.xlu2 %v1230_v11 }
0x11bf   :  { %1207 = vadd.xlane.f32.xlu0 %v1206_v17 }
0x11c0   :  { %1177 = vadd.xlane.f32.xlu1 %v1176_v18 }
0x11c1   :  { %1238 = vadd.xlane.f32.xlu2 %v1237_v20 }
0x122a   :  { %v1201_v21 = vpop.xlane.xlu0 %1200 }
0x122b   :  { %1458 = vlog2.f32 %v1201_v21  ;;  %v1170_v22 = vpop.xlane.xlu1 %1169 }
0x122c   :  { %1460 = vlog2.f32 %v1170_v22  ;;  %v1232_v23 = vpop.xlane.xlu2 %1231 }
0x122d   :  { %1462 = vlog2.f32 %v1232_v23 }
0x1231   :  { %v1459_v10 = vpop.eup %1458 }
0x1232   :  { %v1461_v12 = vpop.eup %1460  ;;  %v1203_v24 = vmul.f32 0.6931472, %v1459_v10  ;;  %v1208_v30 = vpop.xlane.xlu0 %1207 }
0x1233   :  { %v1463_v25 = vpop.eup %1462  ;;  %v1172_v27 = vmul.f32 0.6931472, %v1461_v12  ;;  %v1178_v33 = vpop.xlane.xlu1 %1177 }
0x1234   :  { %v1234_v28 = vmul.f32 0.6931472, %v1463_v25  ;;  %v1204_v29 = vadd.f32 %v1203_v24, %v1194_v51  ;;  %v1239_v36 = vpop.xlane.xlu2 %1238 }
0x1235   :  { %v1173_v32 = vadd.f32 %v1172_v27, %v1163_v52 }
0x1236   :  { %v1209_v48 = vsub.f32 %v1204_v29, %v1208_v30  ;;  %v1235_v2 = vadd.f32 %v1234_v28, %v1225_v57 }
0x1237   :  { %v1179_v35 = vsub.f32 %v1173_v32, %v1178_v33 }
0x1238   :  { %v1210_v53 = vsel %vm1160_vm8, %v1209_v48, 0.0  ;;  %v1240_v37 = vsub.f32 %v1235_v2, %v1239_v36 }
0x1239   :  { %v1211_v38 = vrot.slane %v1210_v53, 4  ;;  %v1180_v39 = vsel %vm1160_vm8, %v1179_v35, 0.0 }
0x123a   :  { %v1181_v40 = vrot.slane %v1180_v39, 4  ;;  %v1241_v6 = vsel %vm1160_vm8, %v1240_v37, 0.0 }
0x123b   :  { %v1212_v41 = vadd.f32 %v1211_v38, %v1210_v53  ;;  %v1242_v42 = vrot.slane %v1241_v6, 4 }
0x123c   :  { %v1182_v55 = vadd.f32 %v1181_v40, %v1180_v39 }
0x123d   :  { %v1213_v19 = vrot.slane %v1212_v41, 2  ;;  %v1243_v43 = vadd.f32 %v1242_v42, %v1241_v6 }
0x123e   :  { %v1183_v44 = vrot.slane %v1182_v55, 2 }
0x123f   :  { %v1214_v45 = vadd.f32 %v1213_v19, %v1212_v41  ;;  %v1244_v46 = vrot.slane %v1243_v43, 2 }
0x1240   :  { %v1184_v47 = vadd.f32 %v1183_v44, %v1182_v55 }
0x1241   :  { %v1215_v49 = vrot.slane %v1214_v45, 1  ;;  %v1245_v34 = vadd.f32 %v1244_v46, %v1243_v43 }
0x1242   :  { %v1185_v31 = vrot.slane %v1184_v47, 1 }
0x1243   :  { %v1216_v50 = vadd.f32 %v1215_v49, %v1214_v45  ;;  %v1246_v26 = vrot.slane %v1245_v34, 1 }
0x1244   :  { %v1186_v51 = vadd.f32 %v1185_v31, %v1184_v47 }
0x1245   :  { %v1217_v52 = vmul.f32 0.5, %v1216_v50  ;;  %v1247_v54 = vadd.f32 %v1246_v26, %v1245_v34 }
0x1246   :  { %v1187_v56 = vmul.f32 0.5, %v1186_v51 }
0x1247   :  { %v1248_v5 = vmul.f32 0.5, %v1247_v54 }
0x1248   :  { %v1218_v57 = vadd.f32 %v1217_v52, %v1187_v56 }
0x124a   :  { %v1249_v58 = vadd.f32 %v1248_v5, %v1218_v57 }
0x124c   :  { %1251 = vst.msk [vmem:[#allocation4] sm:$0x1] %vm1250_vm1, %v1249_v58 }
0x124d   :  { %1273 = dma.vmem_to_hbm [thread:$0]  %s1269_s2, 16, %s1271_s17, [#allocation5]  }
0x124e   :  { %1513 = dma.done.wait [#allocation3], 32  }
0x124f   :  { %1514 = vsyncadd [#allocation3], 4294967264 }
0x1250   :  { %1515 = dma.done.wait [#allocation5], 16  }
0x1251   :  { %1516 = vsyncadd [#allocation5], 4294967280 }
0x1252   :  { %1282 = vsyncpa [#allocation3], 1 }
0x1253   :  { %1283 = vsyncpa [#allocation5], 1 }

</bundles_post_ra>
